<compile_context>
chip_gen: v6e
topology: v6e:2x2x1
jax: 0.10.0
libtpu: 0.0.40
codegen_flags: <defaults>
</compile_context>

<pallas_src>
import functools
import math

import jax
import jax.numpy as jnp
from jax.experimental import pallas as pl
from jax.experimental.pallas import tpu as pltpu


KERNEL_SIZE = 4
STRIDE = 2
PADDING = 2
EPS = 1e-5           # nn.InstanceNorm2d default
NEG_SLOPE = 0.2      # LeakyReLU slope
LANES = 128
_VMEM_LIMIT = 48 * 1024 * 1024   # > 16/32 MiB default scoped limits, < v7x 64 MiB physical


def _round_up(v, m):
    return ((v + m - 1) // m) * m


# --------------------------------------------------------------------------- #
# Kernels
# --------------------------------------------------------------------------- #
def _conv_taps(x_ref, w_ref, *, rows, wh):
    """Accumulate the 16 (kh, kw) tap GEMMs for one row tile.

    x_ref: (1, 4, 1, slab_len, Cin_pad)  parity-split padded input slab (bf16)
    w_ref: (16, Cin_pad, F_pad)          per-tap weight matrices (bf16)
    Returns (rows, F_pad) f32 where rows = row_tile * wh and flat position
    p = r_local * wh + c holds conv (no bias) for output (r0 + r_local, c);
    column c == wh - 1 is a junk column that is masked / sliced off later.
    """
    fpad = w_ref.shape[-1]
    acc = jnp.zeros((rows, fpad), jnp.float32)
    for kh in range(KERNEL_SIZE):
        for kw in range(KERNEL_SIZE):
            tap = kh * KERNEL_SIZE + kw
            parity = (kh % 2) * 2 + (kw % 2)
            off = (kh // 2) * wh + (kw // 2)                  # static offset
            lhs = x_ref[0, parity, 0, pl.ds(off, rows), :]    # (rows, Cin_pad)
            acc = acc + jnp.dot(lhs, w_ref[tap],
                                preferred_element_type=jnp.float32)
    return acc


def _conv_stats_kernel(x_ref, w_ref, valid_ref, conv_ref, stats_ref, *, rows, wh):
    """Pass 1 (norm path): un-normalized conv tile + streaming sum / sumsq."""
    m = pl.program_id(1)
    conv = _conv_taps(x_ref, w_ref, rows=rows, wh=wh)         # (rows, F_pad) f32
    conv_ref[0] = conv.astype(conv_ref.dtype)

    masked = conv * valid_ref[...]                            # zero junk rows/cols
    s1 = jnp.sum(masked, axis=0, keepdims=True)               # (1, F_pad)
    s2 = jnp.sum(masked * conv, axis=0, keepdims=True)        # conv^2 * mask
    upd = jnp.concatenate([s1, s2], axis=0)                   # (2, F_pad)

    @pl.when(m == 0)
    def _init():
        stats_ref[0] = upd

    @pl.when(m > 0)
    def _accum():
        stats_ref[0] = stats_ref[0] + upd


def _conv_bias_lrelu_kernel(x_ref, w_ref, b_ref, out_ref, *, rows, wh):
    """first_layer=True: conv + bias + LeakyReLU, single fused pass."""
    conv = _conv_taps(x_ref, w_ref, rows=rows, wh=wh) + b_ref[...]
    out = jnp.where(conv >= 0, conv, NEG_SLOPE * conv)
    out_ref[0] = out.astype(out_ref.dtype)


def _norm_lrelu_kernel(conv_ref, stats_ref, out_ref, *, inv_count):
    """Pass 2 (norm path): InstanceNorm finalize + LeakyReLU."""
    st = stats_ref[0]                                         # (2, F_pad) f32
    mean = st[0:1, :] * inv_count
    var = jnp.maximum(st[1:2, :] * inv_count - mean * mean, 0.0)
    scale = jax.lax.rsqrt(var + EPS)
    y = (conv_ref[0] - mean) * scale
    y = jnp.where(y >= 0, y, NEG_SLOPE * y)
    out_ref[0] = y.astype(out_ref.dtype)


# --------------------------------------------------------------------------- #
# Wrapper
# --------------------------------------------------------------------------- #
def _pick_row_tile(requested, ho, wh, fpad):
    if requested is None:
        rt = max(1, (2 * 1024 * 1024) // (wh * fpad * 4))     # ~2 MiB f32 conv tile
    else:
        rt = int(requested)
    rt = max(1, min(rt, ho))
    if rt < ho:
        # (row_tile * wh) is the second-minor dim of the conv/output blocks;
        # keep it a multiple of 8 to satisfy the TPU (8,128) block constraint.
        step = 8 // math.gcd(wh, 8)
        rt = max(step, (rt // step) * step)
        rt = min(rt, ho)
    return rt


def ccil_block_forward(x, weight, bias, first_layer, *, row_tile=None,
                       data_format="NCHW", compute_dtype=jnp.bfloat16):
    """CCILBlock forward. x: NCHW (PyTorch layout) or NHWC; same layout out."""
    if data_format == "NCHW":
        x_nhwc = jnp.transpose(x, (0, 2, 3, 1))
    elif data_format == "NHWC":
        x_nhwc = x
    else:
        raise ValueError(data_format)

    N, H, W, Cin = x_nhwc.shape
    F = weight.shape[0]
    out_dtype = x_nhwc.dtype

    Ho = (H + 2 * PADDING - KERNEL_SIZE) // STRIDE + 1
    Wo = (W + 2 * PADDING - KERNEL_SIZE) // STRIDE + 1
    Wh = Wo + 1                       # half-width incl. one junk column
    Fp = _round_up(F, LANES)          # lane-dense output channels
    Cp = _round_up(Cin, 8)

    rt = _pick_row_tile(row_tile, Ho, Wh, Fp)
    nm = -(-Ho // rt)
    Ho_pad = nm * rt
    Hh = Ho_pad + 2                   # half-height incl. zero slack rows
    rows = rt * Wh                    # conv rows per grid step
    slab_len = (rt + 2) * Wh          # flattened half-res input rows per grid step

    # -- input: zero pad (conv pad + tile slack + channel pad), even/odd parity
    #    split, flatten spatial and pre-cut overlapping per-tile slabs so every
    #    in-kernel slice is static.  Only ~(1+2/rt)x duplication of the small
    #    input, never the 16x im2col blow-up.
    pad_b = 2 * Hh - H - PADDING
    pad_r = 2 * Wh - W - PADDING
    x_pad = jnp.pad(x_nhwc, ((0, 0), (PADDING, pad_b), (PADDING, pad_r), (0, Cp - Cin)))
    x_split = (x_pad.reshape(N, Hh, 2, Wh, 2, Cp)
               .transpose(0, 2, 4, 1, 3, 5)                   # (N, ph, pw, i, j, c)
               .reshape(N, 4, Hh * Wh, Cp))
    x_slabs = jnp.stack(
        [x_split[:, :, m * rows:m * rows + slab_len, :] for m in range(nm)],
        axis=2).astype(compute_dtype)                         # (N, 4, nm, slab_len, Cp)

    # -- weights: (F, Cin, 4, 4) -> (16, Cp, Fp): one (Cin, F) matrix per tap.
    w_taps = jnp.transpose(weight, (2, 3, 1, 0)).reshape(KERNEL_SIZE * KERNEL_SIZE, Cin, F)
    w_taps = jnp.pad(w_taps, ((0, 0), (0, Cp - Cin), (0, Fp - F))).astype(compute_dtype)

    x_spec = pl.BlockSpec((1, 4, 1, slab_len, Cp), lambda n, m: (n, 0, m, 0, 0))
    w_spec = pl.BlockSpec((KERNEL_SIZE * KERNEL_SIZE, Cp, Fp), lambda n, m: (0, 0, 0))
    tile_spec = pl.BlockSpec((1, rows, Fp), lambda n, m: (n, m, 0))
    grid = (N, nm)

    if first_layer:
        b_pad = jnp.pad(bias.astype(jnp.float32), (0, Fp - F)).reshape(1, Fp)
        out_flat = pl.pallas_call(
            functools.partial(_conv_bias_lrelu_kernel, rows=rows, wh=Wh),
            out_shape=jax.ShapeDtypeStruct((N, Ho_pad * Wh, Fp), out_dtype),
            grid_spec=pltpu.PrefetchScalarGridSpec(
                num_scalar_prefetch=0, grid=grid,
                in_specs=[x_spec, w_spec, pl.BlockSpec((1, Fp), lambda n, m: (0, 0))],
                out_specs=tile_spec),
            compiler_params=pltpu.CompilerParams(
                dimension_semantics=("parallel", "parallel"),
                vmem_limit_bytes=_VMEM_LIMIT),
        )(x_slabs, w_taps, b_pad)
    else:
        # InstanceNorm(affine=False) is invariant to the per-channel bias shift,
        # so the bias is dropped exactly on this path.
        valid = ((jnp.arange(Ho_pad)[:, None] < Ho) & (jnp.arange(Wh)[None, :] < Wo))
        valid = valid.reshape(Ho_pad * Wh, 1).astype(jnp.float32)

        conv, stats = pl.pallas_call(
            functools.partial(_conv_stats_kernel, rows=rows, wh=Wh),
            out_shape=(jax.ShapeDtypeStruct((N, Ho_pad * Wh, Fp), jnp.float32),
                       jax.ShapeDtypeStruct((N, 2, Fp), jnp.float32)),
            grid_spec=pltpu.PrefetchScalarGridSpec(
                num_scalar_prefetch=0, grid=grid,
                in_specs=[x_spec, w_spec,
                          pl.BlockSpec((rows, 1), lambda n, m: (m, 0))],
                out_specs=[tile_spec,
                           pl.BlockSpec((1, 2, Fp), lambda n, m: (n, 0, 0))]),
            compiler_params=pltpu.CompilerParams(
                dimension_semantics=("parallel", "arbitrary"),
                vmem_limit_bytes=_VMEM_LIMIT),
        )(x_slabs, w_taps, valid)

        alias = {0: 0} if jnp.dtype(out_dtype) == jnp.dtype(jnp.float32) else {}
        out_flat = pl.pallas_call(
            functools.partial(_norm_lrelu_kernel, inv_count=1.0 / float(Ho * Wo)),
            out_shape=jax.ShapeDtypeStruct((N, Ho_pad * Wh, Fp), out_dtype),
            grid_spec=pltpu.PrefetchScalarGridSpec(
                num_scalar_prefetch=0, grid=grid,
                in_specs=[tile_spec,
                          pl.BlockSpec((1, 2, Fp), lambda n, m: (n, 0, 0))],
                out_specs=tile_spec),
            input_output_aliases=alias,
            compiler_params=pltpu.CompilerParams(
                dimension_semantics=("parallel", "parallel"),
                vmem_limit_bytes=_VMEM_LIMIT),
        )(conv, stats)

    out = out_flat.reshape(N, Ho_pad, Wh, Fp)[:, :Ho, :Wo, :F]
    if data_format == "NCHW":
        out = jnp.transpose(out, (0, 3, 1, 2))
    # NOTE: for stacked CCIL blocks, call with data_format="NHWC" to keep the
    # activations channels-last end-to-end and skip both layout transposes.
    return out


# --------------------------------------------------------------------------- #
# Pure-JAX reference and demo
# --------------------------------------------------------------------------- #
def _reference(x, weight, bias, first_layer):
    out = jax.lax.conv_general_dilated(
        x, weight, window_strides=(STRIDE, STRIDE),
        padding=((PADDING, PADDING), (PADDING, PADDING)),
        dimension_numbers=("NCHW", "OIHW", "NCHW"),
    ) + bias.reshape(1, -1, 1, 1)
    if not first_layer:
        mean = jnp.mean(out, axis=(2, 3), keepdims=True)
        var = jnp.mean((out - mean) ** 2, axis=(2, 3), keepdims=True)
        out = (out - mean) * jax.lax.rsqrt(var + EPS)
    return jnp.where(out >= 0, out, NEG_SLOPE * out)


if __name__ == "__main__":
    N, Cin, H, W = 2, 4, 16, 16
    Fc = 8

    key = jax.random.PRNGKey(0)
    kx, kw_, kb = jax.random.split(key, 3)
    x = jax.random.normal(kx, (N, Cin, H, W), dtype=jnp.float32)
    # Conv weights: normal(0, 0.02) per Block.init_conv_weights(init_type='normal')
    weight = 0.02 * jax.random.normal(kw_, (Fc, Cin, KERNEL_SIZE, KERNEL_SIZE),
                                      dtype=jnp.float32)
    # Bias: default Conv2d init ~ U(-1/sqrt(fan_in), 1/sqrt(fan_in)) (zero_bias=False)
    fan_in = Cin * KERNEL_SIZE * KERNEL_SIZE
    bound = 1.0 / (fan_in ** 0.5)
    bias = jax.random.uniform(kb, (Fc,), minval=-bound, maxval=bound, dtype=jnp.float32)

    # The kernel feeds the MXU bf16 operands (f32 accumulation); give the f32
    # reference the same bf16-rounded conv inputs so the comparison is exact.
    x_ref_in = x.astype(jnp.bfloat16).astype(jnp.float32)
    w_ref_in = weight.astype(jnp.bfloat16).astype(jnp.float32)

    configs = [
        (False, None),   # conv + InstanceNorm + LeakyReLU, auto (single) row tile
        (False, 4),      # same, forced multi-tile: exercises the streaming stats path
        (True, None),    # first layer: conv + bias + LeakyReLU only
    ]
    for first_layer, rt in configs:
        out = jax.block_until_ready(
            ccil_block_forward(x, weight, bias, first_layer, row_tile=rt))
        ref = _reference(x_ref_in, w_ref_in, bias, first_layer)
        assert out.shape == ref.shape, (out.shape, ref.shape)
        err = float(jnp.max(jnp.abs(out - ref)))
        assert err < 5e-4, (first_layer, rt, err)

    print("KERNEL_OK")
</pallas_src>

<mosaic_0001>
module attributes {stable_mosaic.version = 11 : i64} {
  func.func @_conv_stats_kernel(%arg0: i32, %arg1: i32, %arg2: memref<1x4x1x110x8xbf16, #tpu.memory_space<vmem>>, %arg3: memref<16x8x128xbf16, #tpu.memory_space<vmem>>, %arg4: memref<90x1xf32, #tpu.memory_space<vmem>>, %arg5: memref<1x90x128xf32, #tpu.memory_space<vmem>>, %arg6: memref<1x2x128xf32, #tpu.memory_space<vmem>>) attributes {dimension_semantics = [#tpu.dimension_semantics<parallel>, #tpu.dimension_semantics<arbitrary>], iteration_bounds = array<i64: 2, 1>, scalar_prefetch = 0 : i64, scratch_operands = 0 : i64, tpu.core_type = #tpu.core_type<tc>, window_params = [{transform_indices = @transform_0, window_bounds = array<i64: 1, 4, 1, 110, 8>}, {pipeline_mode = #tpu.pipeline_mode<synchronous>, transform_indices = @transform_1, window_bounds = array<i64: 16, 8, 128>}, {transform_indices = @transform_2, window_bounds = array<i64: 90, 1>}, {transform_indices = @transform_3, window_bounds = array<i64: 1, 90, 128>}, {transform_indices = @transform_4, window_bounds = array<i64: 1, 2, 128>}]} {
    %cst = arith.constant 0.000000e+00 : f32
    %0 = vector.broadcast %cst : f32 to vector<90x128xf32>
    %c0 = arith.constant 0 : index
    %c0_0 = arith.constant 0 : index
    %c0_1 = arith.constant 0 : index
    %c0_2 = arith.constant 0 : index
    %c0_3 = arith.constant 0 : index
    %1 = vector.load %arg2[%c0, %c0_0, %c0_1, %c0_2, %c0_3] : memref<1x4x1x110x8xbf16, #tpu.memory_space<vmem>>, vector<1x1x1x90x8xbf16>
    %2 = vector.shape_cast %1 : vector<1x1x1x90x8xbf16> to vector<90x8xbf16>
    %c0_4 = arith.constant 0 : index
    %c0_5 = arith.constant 0 : index
    %c0_6 = arith.constant 0 : index
    %3 = vector.load %arg3[%c0_4, %c0_5, %c0_6] : memref<16x8x128xbf16, #tpu.memory_space<vmem>>, vector<1x8x128xbf16>
    %4 = vector.shape_cast %3 : vector<1x8x128xbf16> to vector<8x128xbf16>
    %cst_7 = arith.constant dense<0.000000e+00> : vector<90x128xf32>
    %5 = tpu.matmul %2, %4, %cst_7 {dimension_numbers = #tpu.dot_dimension_numbers<[1], [0], [0], [1], [0, 0, 1, 1], [], []>} : vector<90x8xbf16>, vector<8x128xbf16>, vector<90x128xf32> -> vector<90x128xf32>
    %6 = arith.addf %0, %5 : vector<90x128xf32>
    %c0_8 = arith.constant 0 : index
    %c1 = arith.constant 1 : index
    %c0_9 = arith.constant 0 : index
    %c0_10 = arith.constant 0 : index
    %c0_11 = arith.constant 0 : index
    %7 = vector.load %arg2[%c0_8, %c1, %c0_9, %c0_10, %c0_11] : memref<1x4x1x110x8xbf16, #tpu.memory_space<vmem>>, vector<1x1x1x90x8xbf16>
    %8 = vector.shape_cast %7 : vector<1x1x1x90x8xbf16> to vector<90x8xbf16>
    %c1_12 = arith.constant 1 : index
    %c0_13 = arith.constant 0 : index
    %c0_14 = arith.constant 0 : index
    %9 = vector.load %arg3[%c1_12, %c0_13, %c0_14] : memref<16x8x128xbf16, #tpu.memory_space<vmem>>, vector<1x8x128xbf16>
    %10 = vector.shape_cast %9 : vector<1x8x128xbf16> to vector<8x128xbf16>
    %cst_15 = arith.constant dense<0.000000e+00> : vector<90x128xf32>
    %11 = tpu.matmul %8, %10, %cst_15 {dimension_numbers = #tpu.dot_dimension_numbers<[1], [0], [0], [1], [0, 0, 1, 1], [], []>} : vector<90x8xbf16>, vector<8x128xbf16>, vector<90x128xf32> -> vector<90x128xf32>
    %12 = arith.addf %6, %11 : vector<90x128xf32>
    %c0_16 = arith.constant 0 : index
    %c0_17 = arith.constant 0 : index
    %c0_18 = arith.constant 0 : index
    %c1_19 = arith.constant 1 : index
    %c0_20 = arith.constant 0 : index
    %13 = vector.load %arg2[%c0_16, %c0_17, %c0_18, %c1_19, %c0_20] : memref<1x4x1x110x8xbf16, #tpu.memory_space<vmem>>, vector<1x1x1x90x8xbf16>
    %14 = vector.shape_cast %13 : vector<1x1x1x90x8xbf16> to vector<90x8xbf16>
    %c2 = arith.constant 2 : index
    %c0_21 = arith.constant 0 : index
    %c0_22 = arith.constant 0 : index
    %15 = vector.load %arg3[%c2, %c0_21, %c0_22] : memref<16x8x128xbf16, #tpu.memory_space<vmem>>, vector<1x8x128xbf16>
    %16 = vector.shape_cast %15 : vector<1x8x128xbf16> to vector<8x128xbf16>
    %cst_23 = arith.constant dense<0.000000e+00> : vector<90x128xf32>
    %17 = tpu.matmul %14, %16, %cst_23 {dimension_numbers = #tpu.dot_dimension_numbers<[1], [0], [0], [1], [0, 0, 1, 1], [], []>} : vector<90x8xbf16>, vector<8x128xbf16>, vector<90x128xf32> -> vector<90x128xf32>
    %18 = arith.addf %12, %17 : vector<90x128xf32>
    %c0_24 = arith.constant 0 : index
    %c1_25 = arith.constant 1 : index
    %c0_26 = arith.constant 0 : index
    %c1_27 = arith.constant 1 : index
    %c0_28 = arith.constant 0 : index
    %19 = vector.load %arg2[%c0_24, %c1_25, %c0_26, %c1_27, %c0_28] : memref<1x4x1x110x8xbf16, #tpu.memory_space<vmem>>, vector<1x1x1x90x8xbf16>
    %20 = vector.shape_cast %19 : vector<1x1x1x90x8xbf16> to vector<90x8xbf16>
    %c3 = arith.constant 3 : index
    %c0_29 = arith.constant 0 : index
    %c0_30 = arith.constant 0 : index
    %21 = vector.load %arg3[%c3, %c0_29, %c0_30] : memref<16x8x128xbf16, #tpu.memory_space<vmem>>, vector<1x8x128xbf16>
    %22 = vector.shape_cast %21 : vector<1x8x128xbf16> to vector<8x128xbf16>
    %cst_31 = arith.constant dense<0.000000e+00> : vector<90x128xf32>
    %23 = tpu.matmul %20, %22, %cst_31 {dimension_numbers = #tpu.dot_dimension_numbers<[1], [0], [0], [1], [0, 0, 1, 1], [], []>} : vector<90x8xbf16>, vector<8x128xbf16>, vector<90x128xf32> -> vector<90x128xf32>
    %24 = arith.addf %18, %23 : vector<90x128xf32>
    %c0_32 = arith.constant 0 : index
    %c2_33 = arith.constant 2 : index
    %c0_34 = arith.constant 0 : index
    %c0_35 = arith.constant 0 : index
    %c0_36 = arith.constant 0 : index
    %25 = vector.load %arg2[%c0_32, %c2_33, %c0_34, %c0_35, %c0_36] : memref<1x4x1x110x8xbf16, #tpu.memory_space<vmem>>, vector<1x1x1x90x8xbf16>
    %26 = vector.shape_cast %25 : vector<1x1x1x90x8xbf16> to vector<90x8xbf16>
    %c4 = arith.constant 4 : index
    %c0_37 = arith.constant 0 : index
    %c0_38 = arith.constant 0 : index
    %27 = vector.load %arg3[%c4, %c0_37, %c0_38] : memref<16x8x128xbf16, #tpu.memory_space<vmem>>, vector<1x8x128xbf16>
    %28 = vector.shape_cast %27 : vector<1x8x128xbf16> to vector<8x128xbf16>
    %cst_39 = arith.constant dense<0.000000e+00> : vector<90x128xf32>
    %29 = tpu.matmul %26, %28, %cst_39 {dimension_numbers = #tpu.dot_dimension_numbers<[1], [0], [0], [1], [0, 0, 1, 1], [], []>} : vector<90x8xbf16>, vector<8x128xbf16>, vector<90x128xf32> -> vector<90x128xf32>
    %30 = arith.addf %24, %29 : vector<90x128xf32>
    %c0_40 = arith.constant 0 : index
    %c3_41 = arith.constant 3 : index
    %c0_42 = arith.constant 0 : index
    %c0_43 = arith.constant 0 : index
    %c0_44 = arith.constant 0 : index
    %31 = vector.load %arg2[%c0_40, %c3_41, %c0_42, %c0_43, %c0_44] : memref<1x4x1x110x8xbf16, #tpu.memory_space<vmem>>, vector<1x1x1x90x8xbf16>
    %32 = vector.shape_cast %31 : vector<1x1x1x90x8xbf16> to vector<90x8xbf16>
    %c5 = arith.constant 5 : index
    %c0_45 = arith.constant 0 : index
    %c0_46 = arith.constant 0 : index
    %33 = vector.load %arg3[%c5, %c0_45, %c0_46] : memref<16x8x128xbf16, #tpu.memory_space<vmem>>, vector<1x8x128xbf16>
    %34 = vector.shape_cast %33 : vector<1x8x128xbf16> to vector<8x128xbf16>
    %cst_47 = arith.constant dense<0.000000e+00> : vector<90x128xf32>
    %35 = tpu.matmul %32, %34, %cst_47 {dimension_numbers = #tpu.dot_dimension_numbers<[1], [0], [0], [1], [0, 0, 1, 1], [], []>} : vector<90x8xbf16>, vector<8x128xbf16>, vector<90x128xf32> -> vector<90x128xf32>
    %36 = arith.addf %30, %35 : vector<90x128xf32>
    %c0_48 = arith.constant 0 : index
    %c2_49 = arith.constant 2 : index
    %c0_50 = arith.constant 0 : index
    %c1_51 = arith.constant 1 : index
    %c0_52 = arith.constant 0 : index
    %37 = vector.load %arg2[%c0_48, %c2_49, %c0_50, %c1_51, %c0_52] : memref<1x4x1x110x8xbf16, #tpu.memory_space<vmem>>, vector<1x1x1x90x8xbf16>
    %38 = vector.shape_cast %37 : vector<1x1x1x90x8xbf16> to vector<90x8xbf16>
    %c6 = arith.constant 6 : index
    %c0_53 = arith.constant 0 : index
    %c0_54 = arith.constant 0 : index
    %39 = vector.load %arg3[%c6, %c0_53, %c0_54] : memref<16x8x128xbf16, #tpu.memory_space<vmem>>, vector<1x8x128xbf16>
    %40 = vector.shape_cast %39 : vector<1x8x128xbf16> to vector<8x128xbf16>
    %cst_55 = arith.constant dense<0.000000e+00> : vector<90x128xf32>
    %41 = tpu.matmul %38, %40, %cst_55 {dimension_numbers = #tpu.dot_dimension_numbers<[1], [0], [0], [1], [0, 0, 1, 1], [], []>} : vector<90x8xbf16>, vector<8x128xbf16>, vector<90x128xf32> -> vector<90x128xf32>
    %42 = arith.addf %36, %41 : vector<90x128xf32>
    %c0_56 = arith.constant 0 : index
    %c3_57 = arith.constant 3 : index
    %c0_58 = arith.constant 0 : index
    %c1_59 = arith.constant 1 : index
    %c0_60 = arith.constant 0 : index
    %43 = vector.load %arg2[%c0_56, %c3_57, %c0_58, %c1_59, %c0_60] : memref<1x4x1x110x8xbf16, #tpu.memory_space<vmem>>, vector<1x1x1x90x8xbf16>
    %44 = vector.shape_cast %43 : vector<1x1x1x90x8xbf16> to vector<90x8xbf16>
    %c7 = arith.constant 7 : index
    %c0_61 = arith.constant 0 : index
    %c0_62 = arith.constant 0 : index
    %45 = vector.load %arg3[%c7, %c0_61, %c0_62] : memref<16x8x128xbf16, #tpu.memory_space<vmem>>, vector<1x8x128xbf16>
    %46 = vector.shape_cast %45 : vector<1x8x128xbf16> to vector<8x128xbf16>
    %cst_63 = arith.constant dense<0.000000e+00> : vector<90x128xf32>
    %47 = tpu.matmul %44, %46, %cst_63 {dimension_numbers = #tpu.dot_dimension_numbers<[1], [0], [0], [1], [0, 0, 1, 1], [], []>} : vector<90x8xbf16>, vector<8x128xbf16>, vector<90x128xf32> -> vector<90x128xf32>
    %48 = arith.addf %42, %47 : vector<90x128xf32>
    %c0_64 = arith.constant 0 : index
    %c0_65 = arith.constant 0 : index
    %c0_66 = arith.constant 0 : index
    %c10 = arith.constant 10 : index
    %c0_67 = arith.constant 0 : index
    %49 = vector.load %arg2[%c0_64, %c0_65, %c0_66, %c10, %c0_67] : memref<1x4x1x110x8xbf16, #tpu.memory_space<vmem>>, vector<1x1x1x90x8xbf16>
    %50 = vector.shape_cast %49 : vector<1x1x1x90x8xbf16> to vector<90x8xbf16>
    %c8 = arith.constant 8 : index
    %c0_68 = arith.constant 0 : index
    %c0_69 = arith.constant 0 : index
    %51 = vector.load %arg3[%c8, %c0_68, %c0_69] : memref<16x8x128xbf16, #tpu.memory_space<vmem>>, vector<1x8x128xbf16>
    %52 = vector.shape_cast %51 : vector<1x8x128xbf16> to vector<8x128xbf16>
    %cst_70 = arith.constant dense<0.000000e+00> : vector<90x128xf32>
    %53 = tpu.matmul %50, %52, %cst_70 {dimension_numbers = #tpu.dot_dimension_numbers<[1], [0], [0], [1], [0, 0, 1, 1], [], []>} : vector<90x8xbf16>, vector<8x128xbf16>, vector<90x128xf32> -> vector<90x128xf32>
    %54 = arith.addf %48, %53 : vector<90x128xf32>
    %c0_71 = arith.constant 0 : index
    %c1_72 = arith.constant 1 : index
    %c0_73 = arith.constant 0 : index
    %c10_74 = arith.constant 10 : index
    %c0_75 = arith.constant 0 : index
    %55 = vector.load %arg2[%c0_71, %c1_72, %c0_73, %c10_74, %c0_75] : memref<1x4x1x110x8xbf16, #tpu.memory_space<vmem>>, vector<1x1x1x90x8xbf16>
    %56 = vector.shape_cast %55 : vector<1x1x1x90x8xbf16> to vector<90x8xbf16>
    %c9 = arith.constant 9 : index
    %c0_76 = arith.constant 0 : index
    %c0_77 = arith.constant 0 : index
    %57 = vector.load %arg3[%c9, %c0_76, %c0_77] : memref<16x8x128xbf16, #tpu.memory_space<vmem>>, vector<1x8x128xbf16>
    %58 = vector.shape_cast %57 : vector<1x8x128xbf16> to vector<8x128xbf16>
    %cst_78 = arith.constant dense<0.000000e+00> : vector<90x128xf32>
    %59 = tpu.matmul %56, %58, %cst_78 {dimension_numbers = #tpu.dot_dimension_numbers<[1], [0], [0], [1], [0, 0, 1, 1], [], []>} : vector<90x8xbf16>, vector<8x128xbf16>, vector<90x128xf32> -> vector<90x128xf32>
    %60 = arith.addf %54, %59 : vector<90x128xf32>
    %c0_79 = arith.constant 0 : index
    %c0_80 = arith.constant 0 : index
    %c0_81 = arith.constant 0 : index
    %c11 = arith.constant 11 : index
    %c0_82 = arith.constant 0 : index
    %61 = vector.load %arg2[%c0_79, %c0_80, %c0_81, %c11, %c0_82] : memref<1x4x1x110x8xbf16, #tpu.memory_space<vmem>>, vector<1x1x1x90x8xbf16>
    %62 = vector.shape_cast %61 : vector<1x1x1x90x8xbf16> to vector<90x8xbf16>
    %c10_83 = arith.constant 10 : index
    %c0_84 = arith.constant 0 : index
    %c0_85 = arith.constant 0 : index
    %63 = vector.load %arg3[%c10_83, %c0_84, %c0_85] : memref<16x8x128xbf16, #tpu.memory_space<vmem>>, vector<1x8x128xbf16>
    %64 = vector.shape_cast %63 : vector<1x8x128xbf16> to vector<8x128xbf16>
    %cst_86 = arith.constant dense<0.000000e+00> : vector<90x128xf32>
    %65 = tpu.matmul %62, %64, %cst_86 {dimension_numbers = #tpu.dot_dimension_numbers<[1], [0], [0], [1], [0, 0, 1, 1], [], []>} : vector<90x8xbf16>, vector<8x128xbf16>, vector<90x128xf32> -> vector<90x128xf32>
    %66 = arith.addf %60, %65 : vector<90x128xf32>
    %c0_87 = arith.constant 0 : index
    %c1_88 = arith.constant 1 : index
    %c0_89 = arith.constant 0 : index
    %c11_90 = arith.constant 11 : index
    %c0_91 = arith.constant 0 : index
    %67 = vector.load %arg2[%c0_87, %c1_88, %c0_89, %c11_90, %c0_91] : memref<1x4x1x110x8xbf16, #tpu.memory_space<vmem>>, vector<1x1x1x90x8xbf16>
    %68 = vector.shape_cast %67 : vector<1x1x1x90x8xbf16> to vector<90x8xbf16>
    %c11_92 = arith.constant 11 : index
    %c0_93 = arith.constant 0 : index
    %c0_94 = arith.constant 0 : index
    %69 = vector.load %arg3[%c11_92, %c0_93, %c0_94] : memref<16x8x128xbf16, #tpu.memory_space<vmem>>, vector<1x8x128xbf16>
    %70 = vector.shape_cast %69 : vector<1x8x128xbf16> to vector<8x128xbf16>
    %cst_95 = arith.constant dense<0.000000e+00> : vector<90x128xf32>
    %71 = tpu.matmul %68, %70, %cst_95 {dimension_numbers = #tpu.dot_dimension_numbers<[1], [0], [0], [1], [0, 0, 1, 1], [], []>} : vector<90x8xbf16>, vector<8x128xbf16>, vector<90x128xf32> -> vector<90x128xf32>
    %72 = arith.addf %66, %71 : vector<90x128xf32>
    %c0_96 = arith.constant 0 : index
    %c2_97 = arith.constant 2 : index
    %c0_98 = arith.constant 0 : index
    %c10_99 = arith.constant 10 : index
    %c0_100 = arith.constant 0 : index
    %73 = vector.load %arg2[%c0_96, %c2_97, %c0_98, %c10_99, %c0_100] : memref<1x4x1x110x8xbf16, #tpu.memory_space<vmem>>, vector<1x1x1x90x8xbf16>
    %74 = vector.shape_cast %73 : vector<1x1x1x90x8xbf16> to vector<90x8xbf16>
    %c12 = arith.constant 12 : index
    %c0_101 = arith.constant 0 : index
    %c0_102 = arith.constant 0 : index
    %75 = vector.load %arg3[%c12, %c0_101, %c0_102] : memref<16x8x128xbf16, #tpu.memory_space<vmem>>, vector<1x8x128xbf16>
    %76 = vector.shape_cast %75 : vector<1x8x128xbf16> to vector<8x128xbf16>
    %cst_103 = arith.constant dense<0.000000e+00> : vector<90x128xf32>
    %77 = tpu.matmul %74, %76, %cst_103 {dimension_numbers = #tpu.dot_dimension_numbers<[1], [0], [0], [1], [0, 0, 1, 1], [], []>} : vector<90x8xbf16>, vector<8x128xbf16>, vector<90x128xf32> -> vector<90x128xf32>
    %78 = arith.addf %72, %77 : vector<90x128xf32>
    %c0_104 = arith.constant 0 : index
    %c3_105 = arith.constant 3 : index
    %c0_106 = arith.constant 0 : index
    %c10_107 = arith.constant 10 : index
    %c0_108 = arith.constant 0 : index
    %79 = vector.load %arg2[%c0_104, %c3_105, %c0_106, %c10_107, %c0_108] : memref<1x4x1x110x8xbf16, #tpu.memory_space<vmem>>, vector<1x1x1x90x8xbf16>
    %80 = vector.shape_cast %79 : vector<1x1x1x90x8xbf16> to vector<90x8xbf16>
    %c13 = arith.constant 13 : index
    %c0_109 = arith.constant 0 : index
    %c0_110 = arith.constant 0 : index
    %81 = vector.load %arg3[%c13, %c0_109, %c0_110] : memref<16x8x128xbf16, #tpu.memory_space<vmem>>, vector<1x8x128xbf16>
    %82 = vector.shape_cast %81 : vector<1x8x128xbf16> to vector<8x128xbf16>
    %cst_111 = arith.constant dense<0.000000e+00> : vector<90x128xf32>
    %83 = tpu.matmul %80, %82, %cst_111 {dimension_numbers = #tpu.dot_dimension_numbers<[1], [0], [0], [1], [0, 0, 1, 1], [], []>} : vector<90x8xbf16>, vector<8x128xbf16>, vector<90x128xf32> -> vector<90x128xf32>
    %84 = arith.addf %78, %83 : vector<90x128xf32>
    %c0_112 = arith.constant 0 : index
    %c2_113 = arith.constant 2 : index
    %c0_114 = arith.constant 0 : index
    %c11_115 = arith.constant 11 : index
    %c0_116 = arith.constant 0 : index
    %85 = vector.load %arg2[%c0_112, %c2_113, %c0_114, %c11_115, %c0_116] : memref<1x4x1x110x8xbf16, #tpu.memory_space<vmem>>, vector<1x1x1x90x8xbf16>
    %86 = vector.shape_cast %85 : vector<1x1x1x90x8xbf16> to vector<90x8xbf16>
    %c14 = arith.constant 14 : index
    %c0_117 = arith.constant 0 : index
    %c0_118 = arith.constant 0 : index
    %87 = vector.load %arg3[%c14, %c0_117, %c0_118] : memref<16x8x128xbf16, #tpu.memory_space<vmem>>, vector<1x8x128xbf16>
    %88 = vector.shape_cast %87 : vector<1x8x128xbf16> to vector<8x128xbf16>
    %cst_119 = arith.constant dense<0.000000e+00> : vector<90x128xf32>
    %89 = tpu.matmul %86, %88, %cst_119 {dimension_numbers = #tpu.dot_dimension_numbers<[1], [0], [0], [1], [0, 0, 1, 1], [], []>} : vector<90x8xbf16>, vector<8x128xbf16>, vector<90x128xf32> -> vector<90x128xf32>
    %90 = arith.addf %84, %89 : vector<90x128xf32>
    %c0_120 = arith.constant 0 : index
    %c3_121 = arith.constant 3 : index
    %c0_122 = arith.constant 0 : index
    %c11_123 = arith.constant 11 : index
    %c0_124 = arith.constant 0 : index
    %91 = vector.load %arg2[%c0_120, %c3_121, %c0_122, %c11_123, %c0_124] : memref<1x4x1x110x8xbf16, #tpu.memory_space<vmem>>, vector<1x1x1x90x8xbf16>
    %92 = vector.shape_cast %91 : vector<1x1x1x90x8xbf16> to vector<90x8xbf16>
    %c15 = arith.constant 15 : index
    %c0_125 = arith.constant 0 : index
    %c0_126 = arith.constant 0 : index
    %93 = vector.load %arg3[%c15, %c0_125, %c0_126] : memref<16x8x128xbf16, #tpu.memory_space<vmem>>, vector<1x8x128xbf16>
    %94 = vector.shape_cast %93 : vector<1x8x128xbf16> to vector<8x128xbf16>
    %cst_127 = arith.constant dense<0.000000e+00> : vector<90x128xf32>
    %95 = tpu.matmul %92, %94, %cst_127 {dimension_numbers = #tpu.dot_dimension_numbers<[1], [0], [0], [1], [0, 0, 1, 1], [], []>} : vector<90x8xbf16>, vector<8x128xbf16>, vector<90x128xf32> -> vector<90x128xf32>
    %96 = arith.addf %90, %95 : vector<90x128xf32>
    %c0_128 = arith.constant 0 : index
    %c0_129 = arith.constant 0 : index
    %c0_130 = arith.constant 0 : index
    %97 = vector.load %arg5[%c0_128, %c0_129, %c0_130] : memref<1x90x128xf32, #tpu.memory_space<vmem>>, vector<1x90x128xf32>
    %98 = vector.shape_cast %97 : vector<1x90x128xf32> to vector<90x128xf32>
    %99 = vector.shape_cast %96 : vector<90x128xf32> to vector<1x90x128xf32>
    tpu.vector_store %arg5[%c0_128, %c0_129, %c0_130], %99 {strides = array<i32>} : memref<1x90x128xf32, #tpu.memory_space<vmem>>, vector<1x90x128xf32>,
    %c0_131 = arith.constant 0 : index
    %c0_132 = arith.constant 0 : index
    %100 = vector.load %arg4[%c0_131, %c0_132] : memref<90x1xf32, #tpu.memory_space<vmem>>, vector<90x1xf32>
    %101 = vector.broadcast %100 : vector<90x1xf32> to vector<90x128xf32>
    %102 = arith.mulf %96, %101 : vector<90x128xf32>
    %cst_133 = arith.constant dense<0.000000e+00> : vector<128xf32>
    %103 = vector.multi_reduction <add>, %102, %cst_133 [0] : vector<90x128xf32> to vector<128xf32>
    %104 = vector.shape_cast %103 : vector<128xf32> to vector<1x128xf32>
    %105 = arith.mulf %102, %96 : vector<90x128xf32>
    %cst_134 = arith.constant dense<0.000000e+00> : vector<128xf32>
    %106 = vector.multi_reduction <add>, %105, %cst_134 [0] : vector<90x128xf32> to vector<128xf32>
    %107 = vector.shape_cast %106 : vector<128xf32> to vector<1x128xf32>
    %108 = tpu.concatenate %104, %107 in 0 : vector<1x128xf32>, vector<1x128xf32> -> vector<2x128xf32>
    %c0_i32 = arith.constant 0 : i32
    %109 = arith.cmpi eq, %arg1, %c0_i32 : i32
    %110 = arith.extui %109 : i1 to i32
    %c0_i32_135 = arith.constant 0 : i32
    %111 = arith.cmpi ne, %110, %c0_i32_135 : i32
    scf.if %111 {
      %c0_138 = arith.constant 0 : index
      %c0_139 = arith.constant 0 : index
      %c0_140 = arith.constant 0 : index
      %115 = vector.load %arg6[%c0_138, %c0_139, %c0_140] : memref<1x2x128xf32, #tpu.memory_space<vmem>>, vector<1x2x128xf32>
      %116 = vector.shape_cast %115 : vector<1x2x128xf32> to vector<2x128xf32>
      %117 = vector.shape_cast %108 : vector<2x128xf32> to vector<1x2x128xf32>
      tpu.vector_store %arg6[%c0_138, %c0_139, %c0_140], %117 {strides = array<i32>} : memref<1x2x128xf32, #tpu.memory_space<vmem>>, vector<1x2x128xf32>,
    } else {
    }
    %c0_i32_136 = arith.constant 0 : i32
    %112 = arith.cmpi sgt, %arg1, %c0_i32_136 : i32
    %113 = arith.extui %112 : i1 to i32
    %c0_i32_137 = arith.constant 0 : i32
    %114 = arith.cmpi ne, %113, %c0_i32_137 : i32
    scf.if %114 {
      %c0_138 = arith.constant 0 : index
      %c0_139 = arith.constant 0 : index
      %c0_140 = arith.constant 0 : index
      %115 = vector.load %arg6[%c0_138, %c0_139, %c0_140] : memref<1x2x128xf32, #tpu.memory_space<vmem>>, vector<1x2x128xf32>
      %116 = vector.shape_cast %115 : vector<1x2x128xf32> to vector<2x128xf32>
      %117 = arith.addf %116, %108 : vector<2x128xf32>
      %c0_141 = arith.constant 0 : index
      %c0_142 = arith.constant 0 : index
      %c0_143 = arith.constant 0 : index
      %118 = vector.load %arg6[%c0_141, %c0_142, %c0_143] : memref<1x2x128xf32, #tpu.memory_space<vmem>>, vector<1x2x128xf32>
      %119 = vector.shape_cast %118 : vector<1x2x128xf32> to vector<2x128xf32>
      %120 = vector.shape_cast %117 : vector<2x128xf32> to vector<1x2x128xf32>
      tpu.vector_store %arg6[%c0_141, %c0_142, %c0_143], %120 {strides = array<i32>} : memref<1x2x128xf32, #tpu.memory_space<vmem>>, vector<1x2x128xf32>,
    } else {
    }
    return
  }
  func.func @transform_0(%arg0: i32, %arg1: i32) -> (i32, i32, i32, i32, i32) {
    %c0_i32 = arith.constant 0 : i32
    %c0_i32_0 = arith.constant 0 : i32
    %c0_i32_1 = arith.constant 0 : i32
    %c0_i32_2 = arith.constant 0 : i32
    return %arg0, %c0_i32, %arg1, %c0_i32_0, %c0_i32_1 : i32, i32, i32, i32, i32
  }
  func.func @transform_1(%arg0: i32, %arg1: i32) -> (i32, i32, i32) {
    %c0_i32 = arith.constant 0 : i32
    %c0_i32_0 = arith.constant 0 : i32
    %c0_i32_1 = arith.constant 0 : i32
    %c0_i32_2 = arith.constant 0 : i32
    return %c0_i32, %c0_i32_0, %c0_i32_1 : i32, i32, i32
  }
  func.func @transform_2(%arg0: i32, %arg1: i32) -> (i32, i32) {
    %c0_i32 = arith.constant 0 : i32
    %c0_i32_0 = arith.constant 0 : i32
    return %arg1, %c0_i32 : i32, i32
  }
  func.func @transform_3(%arg0: i32, %arg1: i32) -> (i32, i32, i32) {
    %c0_i32 = arith.constant 0 : i32
    %c0_i32_0 = arith.constant 0 : i32
    return %arg0, %arg1, %c0_i32 : i32, i32, i32
  }
  func.func @transform_4(%arg0: i32, %arg1: i32) -> (i32, i32, i32) {
    %c0_i32 = arith.constant 0 : i32
    %c0_i32_0 = arith.constant 0 : i32
    %c0_i32_1 = arith.constant 0 : i32
    return %arg0, %c0_i32, %c0_i32_0 : i32, i32, i32
  }
}

</mosaic_0001>

<bundles_post_ra>
// kernel: tpu_custom_call.1
= control target key start
LH: loop header
LB: loop body
LE: loop exit
PB: predicated region body
PF: predicated region fallthrough
CT: control target
= control target key end

     0   :  { %10 = vsyncpa [#allocation3], 0  ;;  %s4895_s0 = inlined_call_operand.vmem [shape: bf16[2,4,1,110,8], index: 0, kind: input, shape index: {}]   ;;  %s4896_s1 = inlined_call_operand.vmem [shape: bf16[16,8,128], index: 1, kind: input, shape index: {}]   ;;  %s4897_s2 = inlined_call_operand.vmem [shape: f32[90,1], index: 2, kind: input, shape index: {}]   ;;  %s4898_s3 = inlined_call_operand.vmem [shape: f32[2,90,128], index: 3, kind: output, shape index: {0}]   ;;  %s4899_s4 = inlined_call_operand.hbm [shape: f32[2,2,128], index: 4, kind: output, shape index: {1}]  }
   0x1   :  { %12 = vsyncpa [#allocation3 + $0x1], 0  ;;  %s4045_s15 = smov 0   ;;  %s4047_s16 = smov 0  }
   0x2   :  { %s4049_s17 = smov 0   ;;  %s4051_s18 = smov 0  }
   0x3   :  { %s4053_s19 = smov 0   ;;  %s4055_s20 = smov 0  }
   0x4 LB: > { %s3214_s21 = sadd.s32 4294967295, %s4016_s20   ;;  %s3215_s22 = sadd.s32 4294967294, %s4016_s20   ;;  %s4016_s20 = sphi %s4055_s20, %s18_s20   ;;  %s4012_s19 = sphi %s4053_s19, %s4940_s19   ;;  %s4008_s18 = sphi %s4051_s18, %s4939_s18   ;;  %s4004_s17 = sphi %s4049_s17, %s4938_s17   ;;  %s4000_s16 = sphi %s4047_s16, %s4937_s16   ;;  %s3996_s15 = sphi %s4045_s15, %s4936_s15  }
   0x5   : > { %s30_s23 = sadd.s32 1, %s4012_s19  ;;  %s140_s24 = sadd.s32 1, %s4004_s17 }
   0x6   : > { %p32_p0 = scmp.ge.s32.totalorder %s30_s23, 2  ;;  %p150_p1 = scmp.ne.s32.totalorder %s4004_s17, %s4000_s16 }
   0x7   : > { %p151_p2 = scmp.eq.s32.totalorder %s3214_s21, 1  ;;  %p156_p3 = scmp.ne.s32.totalorder %s4000_s16, %s3996_s15 }
   0x8   : > { %s4942_s23 = smov (%p32_p0, %s30_s23), 0  ;;  %p157_p5 = scmp.eq.s32.totalorder %s3215_s22, 1 }
   0x9   : > { %p4085_p4 = por %p151_p2, %p150_p1  ;;  %s137_s26 = ssub.s32 %s4012_s19, %s4942_s23 }
   0xa   : > { %p3219_p6 = scmp.ge.s32.totalorder %s4016_s20, 1  ;;  %p138_p7 = scmp.eq.s32.totalorder %s137_s26, 0 }
   0xb   : > { %p4092_p8 = por %p157_p5, %p156_p3  ;;  %p199_p9 = scmp.lt.s32.totalorder %s4016_s20, 3 }
   0xc   : > { %s4098_s28 = scalar_select %p138_p7, %s4004_s17, %s140_s24  }
   0xd   : > { %p200_p10 = pnand %p3219_p6, %p199_p9 }
   0xf   : > { %203 = sbr.rel (%p200_p10) target bundleno = 453 (0x1c5), region = 32 }
  0x14   : > { %v3235_v0 = vld [vmem:[%s4896_s1 + $0x4] sm:$0xf]  ;;  %vm346_vm0 = vcmask 1043456   ;;  %v281_v1 = vld [vmem:[%s4896_s1] sm:$0xf]  ;;  %p243_p11 = scmp.lt.s32.totalorder %s4008_s18, 1 }
  0x15   : > { %3808 = vmatprep.subr.msk.bf16.mxu0 %vm346_vm0, %v3235_v0  ;;  %v348_v2 = vsel %vm346_vm0, %v3235_v0, 0  ;;  %3809 = vmatprep.subr.msk.bf16.mxu1 %vm346_vm0, %v281_v1  ;;  %v480_v3 = vsel %vm346_vm0, %v281_v1, 0  ;;  %v3260_v4 = vld [vmem:[%s4896_s1 + $0x8] sm:$0xf]  ;;  %v3269_v5 = vld [vmem:[%s4896_s1 + $0xc] sm:$0xf] }
  0x16   : > { %3585 = vmatpush3.bf16.msra.mxu0 %v348_v2  ;;  %3599 = vmatpush3.bf16.msra.mxu1 %v480_v3  ;;  %s4115_s9 = scalar_select %p243_p11, %s4008_s18, 1  ;;  %vm327_vm1 = vcmask 64512   ;;  %v631_v10 = vsel %vm346_vm0, %v3260_v4, 0  ;;  %v793_v11 = vsel %vm346_vm0, %v3269_v5, 0  ;;  %v3289_v12 = vld [vmem:[%s4896_s1 + $0x10] sm:$0xf] }
  0x17   : > { %3810 = vmatprep.subr.msk.bf16.mxu0 %vm346_vm0, %v3260_v4  ;;  %3811 = vmatprep.subr.msk.bf16.mxu1 %vm346_vm0, %v3269_v5  ;;  %v3314_v13 = vld [vmem:[%s4896_s1 + $0x14] sm:$0xf]  ;;  %vm569_vm2 = vsmask.f32 7424  ;;  %v952_v56 = vsel %vm346_vm0, %v3289_v12, 0  ;;  %vm1574_vm3 = vcmask 1046528  }
  0x18   : > { %s3824_s12 = smul.u32 224, %s4115_s9  ;;  %v1111_v57 = vsel %vm346_vm0, %v3314_v13, 0  ;;  %vm1875_vm4 = vsmask.f32 6400  ;;  %vm3006_vm5 = vcmask 1041408   ;;  %s240_s8 = sand.u32 1, %s4000_s16  }
  0x19   : > { %s3220_s10 = sshll.u32 %s240_s8, 1  ;;  %s3469_s11 = sshll.u32 %s4008_s18, 5  ;;  %vm3045_vm6 = vcmask 1040384  }
  0x1a   : > { %s4126_s21 = scalar_lea.vmem %s4895_s0, %s3824_s12  ;;  %s242_s12 = scalar_lea.vmem [#allocation2], %s3220_s10 }
  0x1b   : > { %v3884_v6 = vld [vmem:[%s4126_s21 + $0x38] sm:$0xff]   ;;  %v3885_v7 = vld [vmem:[%s4126_s21] sm:$0xff]   ;;  %v3887_v9 = vld [vmem:[%s4126_s21 + $0x8] sm:$0xff]   ;;  %s3086_s13 = sshll.u32 %s242_s12, 4  ;;  %s4855_s24 = scalar_lea.hbm %s4899_s4, %s3469_s11  ;;  %s3087_s13 = int_to_ptr.vmem [resolvable:$true] %s3086_s13 }
  0x1c   : > { %3586 = vmatprep.mubr.msk.bf16.mxu0 %vm327_vm1, %v3884_v6  ;;  %3600 = vmatprep.mubr.msk.bf16.mxu1 %vm327_vm1, %v3885_v7  ;;  %v3886_v8 = vld [vmem:[%s4126_s21 + $0x40] sm:$0xff]   ;;  %v4143_v14 = vld [vmem:[%s4126_s21 + $0x48] sm:$0xff]   ;;  %v3889_v15 = vld [vmem:[%s4126_s21 + $0x10] sm:$0xff]   ;;  %v734_v16 = vshll.u32 %v3884_v6, 16  ;;  %v572_v17 = vshll.u32 %v3885_v7, 16  ;;  %v732_v22 = vshrl.u32 %v3884_v6, 16 }
  0x1d   : > { %3587 = vmatmul.mubr.msk.bf16.vlgmr.msra.gmra.mxu0 %vm327_vm1, %v3886_v8  ;;  %3601 = vmatmul.mubr.msk.bf16.vlgmr.msra.gmra.mxu1 %vm327_vm1, %v3887_v9  ;;  %v4152_v18 = vld [vmem:[%s4126_s21 + $0x50] sm:$0xff]   ;;  %v4157_v19 = vld [vmem:[%s4126_s21 + $0x18] sm:$0xff]   ;;  %v4163_v21 = vld [vmem:[%s4126_s21 + $0x20] sm:$0xff]   ;;  %v570_v24 = vshrl.u32 %v3885_v7, 16  ;;  %v576_v27 = vshll.u32 %v3887_v9, 16  ;;  %v738_v29 = vshll.u32 %v3886_v8, 16 }
  0x1e   : > { %3613 = vmatpush3.bf16.msra.mxu0 %v631_v10  ;;  %3627 = vmatpush3.bf16.msra.mxu1 %v793_v11  ;;  %v4160_v20 = vld [vmem:[%s4126_s21 + $0x58] sm:$0xff]   ;;  %v736_v23 = vrot.slane %v734_v16, 1  ;;  %v574_v25 = vrot.slane %v572_v17, 1  ;;  %v3233_v26 = vld [vmem:[%s4126_s21 + $0x60] sm:$0xf]  ;;  %v745_v36 = vshll.u32 %v4143_v14, 16 }
  0x1f   : > { %3590 = vmatprep.mubr.msk.bf16.mxu0 %vm327_vm1, %v4143_v14  ;;  %3604 = vmatprep.mubr.msk.bf16.mxu1 %vm327_vm1, %v3889_v15  ;;  %v3234_v28 = vld [vmem:[%s4126_s21 + $0x64] sm:$0x1]  ;;  %v279_v30 = vld [vmem:[%s4126_s21 + $0x28] sm:$0xf]  ;;  %v280_v31 = vld [vmem:[%s4126_s21 + $0x2c] sm:$0x1] }
  0x20   : > { %3812 = vmatprep.subr.msk.bf16.mxu0 %vm346_vm0, %v3289_v12  ;;  %3813 = vmatprep.subr.msk.bf16.mxu1 %vm346_vm0, %v3314_v13  ;;  %v575_v32 = vor.u32 %v574_v25, %v570_v24  ;;  %v578_v33 = vrot.slane %v576_v27, 1  ;;  %v737_v34 = vor.u32 %v736_v23, %v732_v22  ;;  %v740_v35 = vrot.slane %v738_v29, 1  ;;  %v3268_v40 = vld [vmem:[%s4126_s21 + $0x64] sm:$0x3]  ;;  %v563_v43 = vld [vmem:[%s4126_s21 + $0x2c] sm:$0x3] }
  0x21   : > { %v583_v37 = vshll.u32 %v3889_v15, 16  ;;  %v3241_v38 = vcombine.low %v3233_v26, %v3234_v28  ;;  %v3253_v39 = vcombine.low %v279_v30, %v280_v31  ;;  %v580_v41 = vshrl.u32 %v3887_v9, 16  ;;  %v3328_v10 = vld [vmem:[%s4896_s1 + $0x18] sm:$0xf]  ;;  %v3337_v13 = vld [vmem:[%s4896_s1 + $0x1c] sm:$0xf] }
  0x22   : > { %v742_v42 = vshrl.u32 %v3886_v8, 16  ;;  %v579_v44 = vsel %vm569_vm2, %v575_v32, %v578_v33  ;;  %v741_v45 = vsel %vm569_vm2, %v737_v34, %v740_v35  ;;  %v587_v46 = vshrl.u32 %v3889_v15, 16  ;;  %v3898_v28 = vld [vmem:[%s4126_s21 + $0x70] sm:$0xff]   ;;  %v3899_v29 = vld [vmem:[%s4126_s21 + $0xa8] sm:$0xff]   ;;  %v3902_v34 = vld [vmem:[%s4126_s21 + $0x80] sm:$0xff]   ;;  %s3069_s26 = scalar_lea.sflag [#allocation3], %s240_s8 }
  0x23   : > { %v590_v47 = vshll.u32 %v4157_v19, 16  ;;  %v749_v48 = vshrl.u32 %v4143_v14, 16  ;;  %v752_v49 = vshll.u32 %v4152_v18, 16  ;;  %v747_v50 = vrot.slane %v745_v36, 1  ;;  %v3901_v31 = vld [vmem:[%s4126_s21 + $0xb0] sm:$0xff]   ;;  %s3940_s29 = scalar_lea.vmem %s3087_s13, 32 }
  0x24   : > { %v585_v51 = vrot.slane %v583_v37, 1  ;;  %v582_v52 = vor.u32 %v580_v41, %v578_v33  ;;  %v744_v53 = vor.u32 %v742_v42, %v740_v35  ;;  %v3270_v54 = vcombine.low %v3233_v26, %v3268_v40  ;;  %v3903_v35 = vld [vmem:[%s4126_s21 + $0xb8] sm:$0xff]   ;;  %v3345_v36 = vld [vmem:[%s4896_s1 + $0x20] sm:$0xf]  ;;  %v3370_v37 = vld [vmem:[%s4896_s1 + $0x24] sm:$0xf]  ;;  %p3941_p12 = scmp.ne.s32.totalorder %s3087_s13, %s3940_s29 }
  0x25   : > { %3591 = vmatmul.mubr.msk.bf16.gmra.mxu0 %vm327_vm1, %v4152_v18  ;;  %3605 = vmatmul.mubr.msk.bf16.gmra.mxu1 %vm327_vm1, %v4157_v19  ;;  %v3261_v55 = vcombine.low %v279_v30, %v563_v43  ;;  %v592_v59 = vrot.slane %v590_v47, 1  ;;  %v751_v60 = vor.u32 %v749_v48, %v747_v50  ;;  %v754_v61 = vrot.slane %v752_v49, 1  ;;  %v3900_v30 = vld [vmem:[%s4126_s21 + $0x78] sm:$0xff]   ;;  %v4244_v40 = vld [vmem:[%s4126_s21 + $0x88] sm:$0xff]   ;;  %v4247_v41 = vld [vmem:[%s4126_s21 + $0xc0] sm:$0xff]   ;;  %s4019_s18 = smov [#allocation2]  }
  0x26   : > { %3594 = vmatprep.mubr.msk.bf16.mxu0 %vm327_vm1, %v4160_v20  ;;  %3608 = vmatprep.mubr.msk.bf16.mxu1 %vm327_vm1, %v4163_v21  ;;  %v589_v58 = vor.u32 %v587_v46, %v585_v51  ;;  %v597_v62 = vshll.u32 %v4163_v21, 16  ;;  %v759_v63 = vshll.u32 %v4160_v20, 16  ;;  %v586_v0 = vsel %vm569_vm2, %v582_v52, %v585_v51  ;;  %v4252_v42 = vld [vmem:[%s4126_s21 + $0x90] sm:$0xff]   ;;  %v4255_v43 = vld [vmem:[%s4126_s21 + $0xc8] sm:$0xff]   ;;  %v3288_v51 = vld [vmem:[%s4126_s21 + $0x9c] sm:$0x1]  ;;  %p3942_p13 = pnand %p3941_p12, %p4085_p4 }
  0x27   : > { %v748_v1 = vsel %vm569_vm2, %v744_v53, %v747_v50  ;;  %v594_v2 = vshrl.u32 %v4157_v19, 16  ;;  %v756_v3 = vshrl.u32 %v4152_v18, 16  ;;  %v601_v4 = vshrl.u32 %v4163_v21, 16  ;;  %v3287_v50 = vld [vmem:[%s4126_s21 + $0x98] sm:$0xf]  ;;  %s3944_s30 = sshll.u32 %s4019_s18, 4  ;;  %s3945_s30 = int_to_ptr.vmem [resolvable:$false] %s3944_s30 }
  0x28   : > { %v605_v5 = vshll.u32 %v3261_v55, 16  ;;  %v763_v6 = vshrl.u32 %v4160_v20, 16  ;;  %v767_v7 = vshll.u32 %v3270_v54, 16  ;;  %v593_v8 = vsel %vm569_vm2, %v589_v58, %v592_v59  ;;  %v3312_v52 = vld [vmem:[%s4126_s21 + $0xd0] sm:$0xf]  ;;  %p3943_p0 = pneg %p3942_p13  ;;  %s3946_s5 = scalar_lea.vmem %s3945_s30, 64 }
  0x29   : > { %v755_v9 = vsel %vm569_vm2, %v751_v60, %v754_v61  ;;  %v599_v11 = vrot.slane %v597_v62, 1  ;;  %v761_v12 = vrot.slane %v759_v63, 1  ;;  %v596_v14 = vor.u32 %v594_v2, %v592_v59  ;;  %v3313_v53 = vld [vmem:[%s4126_s21 + $0xd4] sm:$0x1]  ;;  %p3947_p1 = scmp.lt.s32.totalorder %s3087_s13, %s3945_s30  ;;  %p3948_p2 = scmp.lt.s32.totalorder %s3946_s5, %s3940_s29 }
  0x2a   : > { %v758_v15 = vor.u32 %v756_v3, %v754_v61  ;;  %v607_v17 = vrot.slane %v605_v5, 1  ;;  %v769_v19 = vrot.slane %v767_v7, 1  ;;  %v609_v24 = vshrl.u32 %v3261_v55, 16  ;;  %v3336_v3 = vld [vmem:[%s4126_s21 + $0xd4] sm:$0x3] }
  0x2b   : > { %v603_v16 = vor.u32 %v601_v4, %v599_v11  ;;  %v765_v18 = vor.u32 %v763_v6, %v761_v12  ;;  %v600_v20 = vsel %vm569_vm2, %v596_v14, %v599_v11  ;;  %v771_v25 = vshrl.u32 %v3270_v54, 16  ;;  %p3949_p3 = por %p3948_p2, %p3947_p1 }
  0x2c   : > { %v762_v21 = vsel %vm569_vm2, %v758_v15, %v761_v12  ;;  %v611_v26 = vor.u32 %v609_v24, %v607_v17  ;;  %v1273_v32 = vsel %vm346_vm0, %v3328_v10, 0  ;;  %v1435_v33 = vsel %vm346_vm0, %v3337_v13, 0 }
  0x2d   : > { %3595 = vmatmul.mubr.msk.bf16.gmra.mxu0 %vm327_vm1, %v3241_v38  ;;  %3609 = vmatmul.mubr.msk.bf16.gmra.mxu1 %vm327_vm1, %v3253_v39  ;;  %v608_v22 = vsel %vm569_vm2, %v603_v16, %v607_v17  ;;  %v770_v23 = vsel %vm569_vm2, %v765_v18, %v769_v19  ;;  %v773_v27 = vor.u32 %v771_v25, %v769_v19  ;;  %v1214_v38 = vshll.u32 %v3898_v28, 16  ;;  %p3950_p5 = pnand %p3949_p3, %p3943_p0 }
  0x2e   : > { %3614 = vmatprep.mubr.msk.bf16.mxu0 %vm327_vm1, %v579_v44  ;;  %3628 = vmatprep.mubr.msk.bf16.mxu1 %vm327_vm1, %v741_v45  ;;  %v1376_v39 = vshll.u32 %v3899_v29, 16  ;;  %v1212_v44 = vshrl.u32 %v3898_v28, 16  ;;  %v1218_v45 = vshll.u32 %v3900_v30, 16  ;;  %v1374_v47 = vshrl.u32 %v3899_v29, 16 }
  0x2f   : > { %v1216_v46 = vrot.slane %v1214_v38, 1  ;;  %v1380_v49 = vshll.u32 %v3901_v31, 16  ;;  %v3295_v58 = vcombine.low %v3287_v50, %v3288_v51  ;;  %v3320_v59 = vcombine.low %v3312_v52, %v3313_v53 }
  0x30   : > { %v1378_v48 = vrot.slane %v1376_v39, 1  ;;  %v1220_v55 = vrot.slane %v1218_v45, 1  ;;  %v1225_v60 = vshll.u32 %v3902_v34, 16  ;;  %v1387_v61 = vshll.u32 %v3903_v35, 16 }
  0x31   : > { %v1217_v54 = vor.u32 %v1216_v46, %v1212_v44  ;;  %v1222_v62 = vshrl.u32 %v3900_v30, 16  ;;  %v1384_v63 = vshrl.u32 %v3901_v31, 16  ;;  %v1229_v4 = vshrl.u32 %v3902_v34, 16  ;;  %v4306_v44 = vld [vmem:[%s4126_s21 + $0x4] sm:$0xfe]  }
  0x32   : > { %v1232_v5 = vshll.u32 %v4244_v40, 16  ;;  %v1391_v6 = vshrl.u32 %v3903_v35, 16  ;;  %v1394_v7 = vshll.u32 %v4247_v41, 16  ;;  %v1605_v18 = vsel %vm346_vm0, %v3345_v36, 0 }
  0x33   : > { %v1774_v19 = vsel %vm346_vm0, %v3370_v37, 0  ;;  %v1236_v24 = vshrl.u32 %v4244_v40, 16  ;;  %v1398_v25 = vshrl.u32 %v4247_v41, 16 }
  0x34   : > { %v1234_v15 = vrot.slane %v1232_v5, 1  ;;  %v1396_v17 = vrot.slane %v1394_v7, 1  ;;  %v3369_v5 = vld [vmem:[%s4126_s21 + $0x68] sm:$0x3] }
  0x35   : > { %3615 = vmatmul.mubr.msk.bf16.vlgmr.msra.gmra.mxu0 %vm327_vm1, %v586_v0  ;;  %3629 = vmatmul.mubr.msk.bf16.vlgmr.msra.gmra.mxu1 %vm327_vm1, %v748_v1  ;;  %v3327_v0 = vld [vmem:[%s4126_s21 + $0x9c] sm:$0x3]  ;;  %v1221_v1 = vsel %vm569_vm2, %v1217_v54, %v1220_v55 }
  0x36   : > { %3641 = vmatpush3.bf16.msra.mxu0 %v952_v56  ;;  %3655 = vmatpush3.bf16.msra.mxu1 %v1111_v57  ;;  %v1379_v56 = vor.u32 %v1378_v48, %v1374_v47  ;;  %v1382_v57 = vrot.slane %v1380_v49, 1  ;;  %v3329_v12 = vcombine.low %v3287_v50, %v3327_v0  ;;  %v4311_v47 = vld [vmem:[%s4126_s21 + $0xc] sm:$0xff]   ;;  %v4314_v48 = vld [vmem:[%s4126_s21 + $0x3c] sm:$0xfe]   ;;  %v4317_v49 = vld [vmem:[%s4126_s21 + $0x44] sm:$0xff]  }
  0x37   : > { %3618 = vmatprep.mubr.msk.bf16.mxu0 %vm327_vm1, %v593_v8  ;;  %3632 = vmatprep.mubr.msk.bf16.mxu1 %vm327_vm1, %v755_v9  ;;  %v1227_v8 = vrot.slane %v1225_v60, 1  ;;  %v1389_v9 = vrot.slane %v1387_v61, 1  ;;  %v1576_v53 = vrot.slane %v4311_v47, 1  ;;  %v1744_v54 = vrot.slane %v4314_v48, 1 }
  0x38   : > { %3814 = vmatprep.subr.msk.bf16.mxu0 %vm346_vm0, %v3328_v10  ;;  %3815 = vmatprep.subr.msk.bf16.mxu1 %vm346_vm0, %v3337_v13  ;;  %v1383_v2 = vsel %vm569_vm2, %v1379_v56, %v1382_v57  ;;  %v1224_v10 = vor.u32 %v1222_v62, %v1220_v55  ;;  %v1386_v11 = vor.u32 %v1384_v63, %v1382_v57  ;;  %v1251_v50 = vshrl.u32 %v3329_v12, 16  ;;  %v4336_v62 = vld [vmem:[%s4126_s21 + $0x1c] sm:$0xff]   ;;  %v4339_v63 = vld [vmem:[%s4126_s21 + $0x54] sm:$0xff]  }
  0x39   : > { %v3338_v13 = vcombine.low %v3312_v52, %v3336_v3  ;;  %v1231_v14 = vor.u32 %v1229_v4, %v1227_v8  ;;  %v1393_v16 = vor.u32 %v1391_v6, %v1389_v9  ;;  %v1575_v52 = vrot.slane %v4306_v44, 1  ;;  %v1541_v3 = vld [vmem:[%s4126_s21 + $0x30] sm:$0x3]  ;;  %v4352_v4 = vld [vmem:[%s4126_s21 + $0x64] sm:$0xf] }
  0x3a   : > { %v1745_v55 = vrot.slane %v4317_v49, 1  ;;  %v1580_v6 = vrot.slane %v4336_v62, 1  ;;  %v1749_v7 = vrot.slane %v4339_v63, 1 }
  0x3b   : > { %v1413_v51 = vshrl.u32 %v3338_v13, 16  ;;  %v1577_v60 = vsel %vm1574_vm3, %v1575_v52, %v1576_v53 }
  0x3c   : > { %v1746_v61 = vsel %vm1574_vm3, %v1744_v54, %v1745_v55 }
  0x3d   : > { %3619 = vmatmul.mubr.msk.bf16.gmra.mxu0 %vm327_vm1, %v600_v20  ;;  %3633 = vmatmul.mubr.msk.bf16.gmra.mxu1 %vm327_vm1, %v762_v21  ;;  %v1239_v20 = vshll.u32 %v4252_v42, 16  ;;  %v1401_v21 = vshll.u32 %v4255_v43, 16 }
  0x3e   : > { %3622 = vmatprep.mubr.msk.bf16.mxu0 %vm327_vm1, %v608_v22  ;;  %3636 = vmatprep.mubr.msk.bf16.mxu1 %vm327_vm1, %v770_v23  ;;  %v1228_v22 = vsel %vm569_vm2, %v1224_v10, %v1227_v8  ;;  %v1390_v23 = vsel %vm569_vm2, %v1386_v11, %v1389_v9  ;;  %v4358_v8 = vld [vmem:[%s4126_s21 + $0x24] sm:$0xff]   ;;  %v4361_v9 = vld [vmem:[%s4126_s21 + $0x5c] sm:$0xff]  }
  0x45   : > { %3623 = vmatmul.mubr.msk.bf16.gmra.mxu0 %vm327_vm1, %v611_v26  ;;  %3637 = vmatmul.mubr.msk.bf16.gmra.mxu1 %vm327_vm1, %v773_v27  ;;  %v1243_v26 = vshrl.u32 %v4252_v42, 16  ;;  %v1247_v27 = vshll.u32 %v3329_v12, 16 }
  0x46   : > { %3642 = vmatprep.mubr.msk.bf16.mxu0 %vm327_vm1, %v3898_v28  ;;  %3656 = vmatprep.mubr.msk.bf16.mxu1 %vm327_vm1, %v3899_v29  ;;  %v1405_v28 = vshrl.u32 %v4255_v43, 16  ;;  %v1409_v29 = vshll.u32 %v3338_v13, 16  ;;  %v3376_v13 = vcombine.low %v4352_v4, %v3369_v5  ;;  %v2918_v5 = vld [vmem:[%s4897_s2 + $0x30] sm:$0xff] }
  0x47   : > { %v1249_v39 = vrot.slane %v1247_v27, 1  ;;  %v1880_v27 = vshll.u32 %v4306_v44, 16 }
  0x49   : > { %v1253_v56 = vor.u32 %v1251_v50, %v1249_v39 }
  0x4d   : > { %3643 = vmatmul.mubr.msk.bf16.vlgmr.msra.gmra.mxu0 %vm327_vm1, %v3900_v30  ;;  %3657 = vmatmul.mubr.msk.bf16.vlgmr.msra.gmra.mxu1 %vm327_vm1, %v3901_v31  ;;  %v1235_v30 = vsel %vm569_vm2, %v1231_v14, %v1234_v15  ;;  %v1397_v31 = vsel %vm569_vm2, %v1393_v16, %v1396_v17  ;;  %v4018_v16 = vmov 0  }
  0x4e   : > { %3669 = vmatpush3.bf16.msra.mxu0 %v1273_v32  ;;  %3683 = vmatpush3.bf16.msra.mxu1 %v1435_v33  ;;  %v1241_v32 = vrot.slane %v1239_v20, 1  ;;  %v1403_v33 = vrot.slane %v1401_v21, 1  ;;  %v1582_v20 = vrot.slane %v4358_v8, 1  ;;  %v1751_v21 = vrot.slane %v4361_v9, 1 }
  0x4f   : > { %3646 = vmatprep.mubr.msk.bf16.mxu0 %vm327_vm1, %v3902_v34  ;;  %3660 = vmatprep.mubr.msk.bf16.mxu1 %vm327_vm1, %v3903_v35  ;;  %v3383_v34 = vld [vmem:[%s4896_s1 + $0x28] sm:$0xf]  ;;  %v3392_v35 = vld [vmem:[%s4896_s1 + $0x2c] sm:$0xf] }
  0x50   : > { %3816 = vmatprep.subr.msk.bf16.mxu0 %vm346_vm0, %v3345_v36  ;;  %3817 = vmatprep.subr.msk.bf16.mxu1 %vm346_vm0, %v3370_v37  ;;  %v1238_v36 = vor.u32 %v1236_v24, %v1234_v15  ;;  %v1400_v37 = vor.u32 %v1398_v25, %v1396_v17  ;;  %v1245_v38 = vor.u32 %v1243_v26, %v1241_v32  ;;  %v1948_v14 = vsel %vm346_vm0, %v3383_v34, 0  ;;  %v2912_v17 = vld [vmem:[%s4897_s2] sm:$0xff]  ;;  %v4384_v24 = vld [vmem:[%s4896_s1 + $0x30] sm:$0xf]  ;;  %v4389_v25 = vld [vmem:[%s4896_s1 + $0x34] sm:$0xf] }
  0x51   : > { %v2121_v15 = vsel %vm346_vm0, %v3392_v35, 0  ;;  %3882 = vset.pattern.permute.xlu0 %v4018_v16  ;;  %3883 = vset.pattern.permute.xlu1 %v4018_v16  ;;  %v4391_v26 = vrot.slane %v3376_v13, 1 }
  0x52   : > { %v1250_v45 = vsel %vm569_vm2, %v1245_v38, %v1249_v39  ;;  %2926 = vperm.xlu0 %3882, %v2912_v17  }
  0x55   : > { %3647 = vmatmul.mubr.msk.bf16.gmra.mxu0 %vm327_vm1, %v4244_v40  ;;  %3661 = vmatmul.mubr.msk.bf16.gmra.mxu1 %vm327_vm1, %v4247_v41  ;;  %v1407_v40 = vor.u32 %v1405_v28, %v1403_v33  ;;  %v1411_v41 = vrot.slane %v1409_v29, 1  ;;  %v1885_v28 = vshrl.u32 %v4311_v47, 16  ;;  %v1888_v29 = vshll.u32 %v4311_v47, 16 }
  0x56   : > { %3650 = vmatprep.mubr.msk.bf16.mxu0 %vm327_vm1, %v4252_v42  ;;  %3664 = vmatprep.mubr.msk.bf16.mxu1 %vm327_vm1, %v4255_v43  ;;  %v1242_v42 = vsel %vm569_vm2, %v1238_v36, %v1241_v32  ;;  %v1404_v43 = vsel %vm569_vm2, %v1400_v37, %v1403_v33  ;;  %v2053_v32 = vshll.u32 %v4314_v48, 16  ;;  %v2058_v33 = vshrl.u32 %v4317_v49, 16 }
  0x57   : > { %v1412_v46 = vsel %vm569_vm2, %v1407_v40, %v1411_v41  ;;  %v1415_v57 = vor.u32 %v1413_v51, %v1411_v41  ;;  %v1583_v36 = vsel %vm1574_vm3, %v1580_v6, %v1582_v20  ;;  %v1752_v37 = vsel %vm1574_vm3, %v1749_v7, %v1751_v21 }
  0x58   : > { %v1754_v40 = vsel %vm1574_vm3, %v1751_v21, %v4391_v26  ;;  %v1882_v41 = vrot.slane %v1880_v27, 2  ;;  %v1915_v21 = vshll.u32 %v4358_v8, 16  ;;  %v2088_v27 = vshll.u32 %v4361_v9, 16 }
  0x5d   : > { %3651 = vmatmul.mubr.msk.bf16.gmra.mxu0 %vm327_vm1, %v3295_v58  ;;  %3665 = vmatmul.mubr.msk.bf16.gmra.mxu1 %vm327_vm1, %v3320_v59  ;;  %v4328_v58 = vld [vmem:[%s4126_s21 + $0x14] sm:$0xff]   ;;  %v4331_v59 = vld [vmem:[%s4126_s21 + $0x4c] sm:$0xff]  }
  0x5e   : > { %3670 = vmatprep.mubr.msk.bf16.mxu0 %vm327_vm1, %v1221_v1  ;;  %3684 = vmatprep.mubr.msk.bf16.mxu1 %vm327_vm1, %v1383_v2  ;;  %v1578_v0 = vrot.slane %v4328_v58, 1  ;;  %v1747_v1 = vrot.slane %v4331_v59, 1  ;;  %v4348_v2 = vld [vmem:[%s4126_s21 + $0x2c] sm:$0xf]  ;;  %v1894_v50 = vshrl.u32 %v4328_v58, 16  ;;  %v1897_v51 = vshll.u32 %v4328_v58, 16 }
  0x5f   : > { %v3351_v10 = vcombine.low %v4348_v2, %v1541_v3  ;;  %v2070_v54 = vshll.u32 %v4331_v59, 16  ;;  %v1906_v58 = vshll.u32 %v4336_v62, 16  ;;  %v2079_v3 = vshll.u32 %v4339_v63, 16 }
  0x60   : > { %v1579_v11 = vsel %vm1574_vm3, %v1576_v53, %v1578_v0  ;;  %v1748_v12 = vsel %vm1574_vm3, %v1745_v55, %v1747_v1  ;;  %v2067_v53 = vshrl.u32 %v4331_v59, 16  ;;  %v1869_v55 = vld [vmem:[%s4126_s21 + $0x30] sm:$0x7]  ;;  %v2917_v59 = vld [vmem:[%s4897_s2 + $0x28] sm:$0xff] }
  0x61   : > { %v2081_v17 = vrot.slane %v2079_v3, 2  ;;  %v4515_v3 = vld [vmem:[%s4126_s21 + $0x84] sm:$0xff]  }
  0x65   : > { %3671 = vmatmul.mubr.msk.bf16.vlgmr.msra.gmra.mxu0 %vm327_vm1, %v1228_v22  ;;  %3685 = vmatmul.mubr.msk.bf16.vlgmr.msra.gmra.mxu1 %vm327_vm1, %v1390_v23  ;;  %v4378_v22 = vrot.slane %v3351_v10, 1  ;;  %v1877_v23 = vshrl.u32 %v4306_v44, 16  ;;  %v3384_v10 = vcombine.low %v4348_v2, %v1869_v55  ;;  %v2920_v2 = vld [vmem:[%s4897_s2 + $0x40] sm:$0xff] }
  0x66   : > { %3697 = vmatpush3.bf16.msra.mxu0 %v1605_v18  ;;  %3711 = vmatpush3.bf16.msra.mxu1 %v1774_v19  ;;  %v1581_v18 = vsel %vm1574_vm3, %v1578_v0, %v1580_v6  ;;  %v1750_v19 = vsel %vm1574_vm3, %v1747_v1, %v1749_v7  ;;  %v1903_v0 = vshrl.u32 %v4336_v62, 16  ;;  %v2076_v1 = vshrl.u32 %v4339_v63, 16 }
  0x67   : > { %3674 = vmatprep.mubr.msk.bf16.mxu0 %vm327_vm1, %v1235_v30  ;;  %3688 = vmatprep.mubr.msk.bf16.mxu1 %vm327_vm1, %v1397_v31  ;;  %v2914_v30 = vld [vmem:[%s4897_s2 + $0x10] sm:$0xff]  ;;  %v2050_v31 = vshrl.u32 %v4314_v48, 16  ;;  %v1585_v38 = vsel %vm1574_vm3, %v1582_v20, %v4378_v22  ;;  %v1879_v39 = vrot.slane %v1877_v23, 1  ;;  %v2915_v48 = vld [vmem:[%s4897_s2 + $0x18] sm:$0xff]  ;;  %v1896_v6 = vrot.slane %v1894_v50, 1 }
  0x68   : > { %3818 = vmatprep.subr.msk.bf16.mxu0 %vm346_vm0, %v3383_v34  ;;  %3819 = vmatprep.subr.msk.bf16.mxu1 %vm346_vm0, %v3392_v35  ;;  %v2061_v34 = vshll.u32 %v4317_v49, 16  ;;  %v2913_v35 = vld [vmem:[%s4897_s2 + $0x8] sm:$0xff]  ;;  %v2916_v49 = vld [vmem:[%s4897_s2 + $0x20] sm:$0xff]  ;;  %v1899_v7 = vrot.slane %v1897_v51, 2  ;;  %v2078_v16 = vrot.slane %v2076_v1, 1  ;;  %v2085_v23 = vshrl.u32 %v4361_v9, 16 }
  0x69   : > { %2936 = vperm.xlu1 %3883, %v2914_v30   ;;  %2931 = vperm.xlu0 %3882, %v2913_v35   ;;  %v2052_v44 = vrot.slane %v2050_v31, 1  ;;  %v1883_v52 = vor.u32 %v1882_v41, %v1879_v39  ;;  %v2290_v9 = vsel %vm346_vm0, %v4384_v24, 0  ;;  %v2090_v39 = vrot.slane %v2088_v27, 2 }
  0x6a   : > { %v2063_v47 = vrot.slane %v2061_v34, 2  ;;  %v2082_v31 = vor.u32 %v2081_v17, %v2078_v16  ;;  %v2459_v34 = vsel %vm346_vm0, %v4389_v25, 0  ;;  %v4545_v17 = vld [vmem:[%s4126_s21 + $0x94] sm:$0xff]  }
  0x6d   : > { %3675 = vmatmul.mubr.msk.bf16.gmra.mxu0 %vm327_vm1, %v1242_v42  ;;  %3689 = vmatmul.mubr.msk.bf16.gmra.mxu1 %vm327_vm1, %v1404_v43  ;;  %v1887_v42 = vrot.slane %v1885_v28, 1  ;;  %v1890_v43 = vrot.slane %v1888_v29, 2  ;;  %v1921_v28 = vshrl.u32 %v3384_v10, 16  ;;  %v1924_v29 = vshll.u32 %v3384_v10, 16  ;;  %v4526_v10 = vld [vmem:[%s4126_s21 + $0xc4] sm:$0xff]  }
  0x6e   : > { %3678 = vmatprep.mubr.msk.bf16.mxu0 %vm327_vm1, %v1250_v45  ;;  %3692 = vmatprep.mubr.msk.bf16.mxu1 %vm327_vm1, %v1412_v46  ;;  %v2055_v45 = vrot.slane %v2053_v32, 2  ;;  %v2060_v46 = vrot.slane %v2058_v33, 1  ;;  %v2921_v32 = vld [vmem:[%s4897_s2 + $0x48] sm:$0xff]  ;;  %v2434_v16 = vrot.slane %v4526_v10, 1 }
  0x6f   : > { %2941 = vperm.xlu1 %3883, %v2915_v48   ;;  %2946 = vperm.xlu0 %3882, %v2916_v49   ;;  %v1926_v41 = vrot.slane %v1924_v29, 2  ;;  %v2923_v48 = vld [vmem:[%s4897_s2 + $0x58] sm:$0x3]  ;;  %v2267_v29 = vrot.slane %v4545_v17, 1 }
  0x73   : > { %2951 = vperm.xlu1 %3883, %v2917_v59   ;;  %2956 = vperm.xlu0 %3882, %v2918_v5   ;;  %v4518_v59 = vld [vmem:[%s4126_s21 + $0xbc] sm:$0xff]  }
  0x75   : > { %3679 = vmatmul.mubr.msk.bf16.gmra.mxu0 %vm327_vm1, %v1253_v56  ;;  %3693 = vmatmul.mubr.msk.bf16.gmra.mxu1 %vm327_vm1, %v1415_v57  ;;  %v3391_v56 = vld [vmem:[%s4126_s21 + $0x68] sm:$0x7]  ;;  %v1891_v57 = vor.u32 %v1890_v43, %v1887_v42 }
  0x76   : > { %3698 = vmatprep.mubr.msk.bf16.mxu0 %vm327_vm1, %v1577_v60  ;;  %3712 = vmatprep.mubr.msk.bf16.mxu1 %vm327_vm1, %v1746_v61  ;;  %v2056_v60 = vor.u32 %v2055_v45, %v2052_v44  ;;  %v2064_v61 = vor.u32 %v2063_v47, %v2060_v46  ;;  %v3393_v62 = vcombine.low %v4352_v4, %v3391_v56  ;;  %v3926_v56 = vld [vmem:[%s4126_s21 + $0x74] sm:$0xfe]  }
  0x77   : > { %v1892_v13 = vsel %vm1875_vm4, %v1883_v52, %v1891_v57  ;;  %v1900_v4 = vor.u32 %v1899_v7, %v1896_v6  ;;  %2966 = vperm.xlu0 %3882, %v2920_v2   ;;  %v4523_v7 = vld [vmem:[%s4126_s21 + $0x8c] sm:$0xff]  }
  0x78   : > { %v2065_v63 = vsel %vm1875_vm4, %v2056_v60, %v2064_v61  ;;  %v2097_v30 = vshll.u32 %v3393_v62, 16  ;;  %v4505_v60 = vld [vmem:[%s4126_s21 + $0xb4] sm:$0xff]  }
  0x79   : > { %v1901_v33 = vsel %vm1875_vm4, %v1891_v57, %v1900_v4  ;;  %v4502_v57 = vld [vmem:[%s4126_s21 + $0xac] sm:$0xfe]   ;;  %v2430_v1 = vrot.slane %v4505_v60, 1 }
  0x7a   : > { %v2099_v43 = vrot.slane %v2097_v30, 2 }
  0x7d   : > { %3699 = vmatmul.mubr.msk.bf16.vlgmr.msra.gmra.mxu0 %vm327_vm1, %v1579_v11  ;;  %3713 = vmatmul.mubr.msk.bf16.vlgmr.msra.gmra.mxu1 %vm327_vm1, %v1748_v12  ;;  %v2069_v11 = vrot.slane %v2067_v53, 1  ;;  %v2072_v12 = vrot.slane %v2070_v54, 2  ;;  %v4496_v53 = vld [vmem:[%s4126_s21 + $0x7c] sm:$0xff]  }
  0x7e   : > { %3725 = vmatpush3.bf16.msra.mxu0 %v1948_v14  ;;  %3739 = vmatpush3.bf16.msra.mxu1 %v2121_v15  ;;  %v1905_v14 = vrot.slane %v1903_v0, 1  ;;  %v1908_v15 = vrot.slane %v1906_v58, 2  ;;  %v2261_v0 = vrot.slane %v4496_v53, 1  ;;  %v2429_v58 = vrot.slane %v4502_v57, 1 }
  0x7f   : > { %3702 = vmatprep.mubr.msk.bf16.mxu0 %vm327_vm1, %v1581_v18  ;;  %3716 = vmatprep.mubr.msk.bf16.mxu1 %vm327_vm1, %v1750_v19  ;;  %v2919_v18 = vld [vmem:[%s4897_s2 + $0x38] sm:$0xff]  ;;  %v1912_v19 = vshrl.u32 %v4358_v8, 16  ;;  %v2073_v20 = vor.u32 %v2072_v12, %v2069_v11  ;;  %v2922_v8 = vld [vmem:[%s4897_s2 + $0x50] sm:$0xff]  ;;  %v2263_v11 = vrot.slane %v4515_v3, 1  ;;  %v2432_v12 = vrot.slane %v4518_v59, 1 }
  0x80   : > { %3820 = vmatprep.subr.msk.bf16.mxu0 %vm346_vm0, %v4384_v24  ;;  %3821 = vmatprep.subr.msk.bf16.mxu1 %vm346_vm0, %v4389_v25  ;;  %v3451_v24 = vld [vmem:[%s4896_s1 + $0x38] sm:$0xf]  ;;  %v3460_v25 = vld [vmem:[%s4896_s1 + $0x3c] sm:$0xf]  ;;  %v2431_v6 = vsel %vm1574_vm3, %v2429_v58, %v2430_v1 }
  0x81   : > { %2961 = vperm.xlu1 %3883, %v2919_v18   ;;  %v1914_v35 = vrot.slane %v1912_v19, 1  ;;  %2976 = vperm.xlu0 %3882, %v2922_v8   ;;  %v2083_v45 = vsel %vm1875_vm4, %v2073_v20, %v2082_v31  ;;  %v4548_v18 = vld [vmem:[%s4126_s21 + $0xcc] sm:$0xff]   ;;  %v2264_v19 = vsel %vm1574_vm3, %v2261_v0, %v2263_v11  ;;  %v2569_v8 = vshrl.u32 %v4496_v53, 16 }
  0x85   : > { %3703 = vmatmul.mubr.msk.bf16.gmra.mxu0 %vm327_vm1, %v1583_v36  ;;  %3717 = vmatmul.mubr.msk.bf16.gmra.mxu1 %vm327_vm1, %v1752_v37  ;;  %v2074_v36 = vsel %vm1875_vm4, %v2064_v61, %v2073_v20  ;;  %v1917_v37 = vrot.slane %v1915_v21, 2  ;;  %v2260_v61 = vrot.slane %v3926_v56, 1  ;;  %v2433_v20 = vsel %vm1574_vm3, %v2430_v1, %v2432_v12 }
  0x86   : > { %3706 = vmatprep.mubr.msk.bf16.mxu0 %vm327_vm1, %v1585_v38  ;;  %3720 = vmatprep.mubr.msk.bf16.mxu1 %vm327_vm1, %v1754_v40  ;;  %v2087_v38 = vrot.slane %v2085_v23, 1  ;;  %v1923_v40 = vrot.slane %v1921_v28, 1  ;;  %v2632_v21 = vsel %vm346_vm0, %v3451_v24, 0  ;;  %v2805_v23 = vsel %vm346_vm0, %v3460_v25, 0 }
  0x87   : > { %2971 = vperm.xlu1 %3883, %v2921_v32   ;;  %v1918_v46 = vor.u32 %v1917_v37, %v1914_v35  ;;  %v2262_v5 = vsel %vm1574_vm3, %v2260_v61, %v2261_v0  ;;  %v2435_v28 = vsel %vm1574_vm3, %v2432_v12, %v2434_v16  ;;  %v2564_v32 = vshll.u32 %v3926_v56, 16 }
  0x88   : > { %v2091_v47 = vor.u32 %v2090_v39, %v2087_v38  ;;  %v1927_v49 = vor.u32 %v1926_v41, %v1923_v40  ;;  %v2742_v35 = vshrl.u32 %v4505_v60, 16  ;;  %v2760_v61 = vshrl.u32 %v4526_v10, 16 }
  0x89   : > { %v2763_v0 = vshll.u32 %v4526_v10, 16 }
  0x8a   : > { %v2092_v52 = vsel %vm1875_vm4, %v2082_v31, %v2091_v47  ;;  %v1928_v54 = vsel %vm1875_vm4, %v1918_v46, %v1927_v49  ;;  %v2561_v31 = vshrl.u32 %v3926_v56, 16  ;;  %v3459_v56 = vld [vmem:[%s4126_s21 + $0xd8] sm:$0x7] }
  0x8b   : > { %2981 = vperm.xlu1 %3883, %v2923_v48   ;;  %v2581_v48 = vshll.u32 %v4515_v3, 16 }
  0x8c   : > { %v2563_v41 = vrot.slane %v2561_v31, 1 }
  0x8d   : > { %3707 = vmatmul.mubr.msk.bf16.gmra.mxu0 %vm327_vm1, %v4378_v22  ;;  %3721 = vmatmul.mubr.msk.bf16.gmra.mxu1 %vm327_vm1, %v4391_v26  ;;  %v2094_v22 = vshrl.u32 %v3393_v62, 16  ;;  %v1909_v26 = vor.u32 %v1908_v15, %v1905_v14  ;;  %v4533_v62 = vld [vmem:[%s4126_s21 + $0x9c] sm:$0xf]  ;;  %v3436_v14 = vld [vmem:[%s4126_s21 + $0xd8] sm:$0x3]  ;;  %v2265_v15 = vrot.slane %v4523_v7, 1 }
  0x8e   : > { %3726 = vmatprep.mubr.msk.bf16.mxu0 %vm327_vm1, %v1892_v13  ;;  %3740 = vmatprep.mubr.msk.bf16.mxu1 %vm327_vm1, %v2065_v63  ;;  %v3411_v13 = vld [vmem:[%s4126_s21 + $0xa0] sm:$0x3]  ;;  %v4539_v63 = vld [vmem:[%s4126_s21 + $0xd4] sm:$0xf]  ;;  %v2583_v1 = vrot.slane %v2581_v48, 2 }
  0x8f   : > { %v2096_v42 = vrot.slane %v2094_v22, 1  ;;  %v1910_v44 = vsel %vm1875_vm4, %v1900_v4, %v1909_v26  ;;  %v1919_v51 = vsel %vm1875_vm4, %v1909_v26, %v1918_v46  ;;  %v3418_v2 = vcombine.low %v4533_v62, %v3411_v13 }
  0x90   : > { %v3443_v4 = vcombine.low %v4539_v63, %v3436_v14  ;;  %v2266_v27 = vsel %vm1574_vm3, %v2263_v11, %v2265_v15  ;;  %v2436_v22 = vrot.slane %v4548_v18, 1  ;;  %v2268_v37 = vsel %vm1574_vm3, %v2265_v15, %v2267_v29 }
  0x91   : > { %v2100_v50 = vor.u32 %v2099_v43, %v2096_v42  ;;  %v2269_v30 = vrot.slane %v3418_v2, 1  ;;  %v2566_v42 = vrot.slane %v2564_v32, 2  ;;  %v2571_v43 = vrot.slane %v2569_v8, 1 }
  0x92   : > { %v2438_v26 = vrot.slane %v3443_v4, 1  ;;  %v2437_v38 = vsel %vm1574_vm3, %v2434_v16, %v2436_v22  ;;  %v3461_v11 = vcombine.low %v4539_v63, %v3459_v56  ;;  %v2762_v14 = vrot.slane %v2760_v61, 1 }
  0x93   : > { %v2101_v55 = vsel %vm1875_vm4, %v2091_v47, %v2100_v50  ;;  %v2270_v39 = vsel %vm1574_vm3, %v2267_v29, %v2269_v30  ;;  %v2578_v47 = vshrl.u32 %v4515_v3, 16  ;;  %v2765_v15 = vrot.slane %v2763_v0, 2 }
  0x94   : > { %v2439_v40 = vsel %vm1574_vm3, %v2436_v22, %v2438_v26  ;;  %v2596_v4 = vshrl.u32 %v4545_v17, 16  ;;  %v2769_v63 = vshrl.u32 %v4548_v18, 16 }
  0x95   : > { %3727 = vmatmul.mubr.msk.bf16.vlgmr.msra.gmra.mxu0 %vm327_vm1, %v1901_v33  ;;  %3741 = vmatmul.mubr.msk.bf16.vlgmr.msra.gmra.mxu1 %vm327_vm1, %v2074_v36  ;;  %v2572_v33 = vshll.u32 %v4496_v53, 16  ;;  %v2745_v36 = vshll.u32 %v4505_v60, 16  ;;  %v2567_v53 = vor.u32 %v2566_v42, %v2563_v41  ;;  %v2580_v58 = vrot.slane %v2578_v47, 1 }
  0x96   : > { %3753 = vmatpush3.bf16.msra.mxu0 %v2290_v9  ;;  %3767 = vmatpush3.bf16.msra.mxu1 %v2459_v34  ;;  %v2734_v9 = vshrl.u32 %v4502_v57, 16  ;;  %v2737_v34 = vshll.u32 %v4502_v57, 16  ;;  %v2771_v32 = vrot.slane %v2769_v63, 1 }
  0x97   : > { %3730 = vmatprep.mubr.msk.bf16.mxu0 %vm327_vm1, %v1910_v44  ;;  %3744 = vmatprep.mubr.msk.bf16.mxu1 %vm327_vm1, %v2083_v45  ;;  %v2574_v44 = vrot.slane %v2572_v33, 2  ;;  %v2747_v46 = vrot.slane %v2745_v36, 2  ;;  %v2584_v10 = vor.u32 %v2583_v1, %v2580_v58 }
  0x98   : > { %3822 = vmatprep.subr.msk.bf16.mxu0 %vm346_vm0, %v3451_v24  ;;  %3823 = vmatprep.subr.msk.bf16.mxu1 %vm346_vm0, %v3460_v25  ;;  %v2736_v45 = vrot.slane %v2734_v9, 1  ;;  %v2739_v24 = vrot.slane %v2737_v34, 2  ;;  %v2744_v25 = vrot.slane %v2742_v35, 1 }
  0x9a   : > { %v2740_v57 = vor.u32 %v2739_v24, %v2736_v45  ;;  %v2748_v60 = vor.u32 %v2747_v46, %v2744_v25 }
  0x9c   : > { %v2749_v13 = vsel %vm1875_vm4, %v2740_v57, %v2748_v60 }
  0x9d   : > { %3731 = vmatmul.mubr.msk.bf16.gmra.mxu0 %vm327_vm1, %v1919_v51  ;;  %3745 = vmatmul.mubr.msk.bf16.gmra.mxu1 %vm327_vm1, %v2092_v52  ;;  %v2587_v51 = vshrl.u32 %v4523_v7, 16  ;;  %v2590_v52 = vshll.u32 %v4523_v7, 16 }
  0x9e   : > { %3734 = vmatprep.mubr.msk.bf16.mxu0 %vm327_vm1, %v1928_v54  ;;  %3748 = vmatprep.mubr.msk.bf16.mxu1 %vm327_vm1, %v2101_v55  ;;  %v2575_v54 = vor.u32 %v2574_v44, %v2571_v43  ;;  %v3450_v55 = vld [vmem:[%s4126_s21 + $0xa0] sm:$0x7]  ;;  %s3825_s21 = smul.u32 96, %s4115_s9 }
  0x9f   : > { %v3452_v7 = vcombine.low %v4533_v62, %v3450_v55  ;;  %v2599_v62 = vshll.u32 %v4545_v17, 16 }
  0xa0   : > { %v2576_v12 = vsel %vm1875_vm4, %v2567_v53, %v2575_v54  ;;  %v2585_v29 = vsel %vm1875_vm4, %v2575_v54, %v2584_v10  ;;  %s4790_s7 = scalar_lea.vmem %s4898_s3, %s3825_s21 }
  0xa1   : > { %v2601_v31 = vrot.slane %v2599_v62, 2 }
  0xa5   : > { %3735 = vmatmul.mubr.msk.bf16.gmra.mxu0 %vm327_vm1, %v1927_v49  ;;  %3749 = vmatmul.mubr.msk.bf16.gmra.mxu1 %vm327_vm1, %v2100_v50  ;;  %v2751_v49 = vshrl.u32 %v4518_v59, 16  ;;  %v2754_v50 = vshll.u32 %v4518_v59, 16 }
  0xa6   : > { %3754 = vmatprep.mubr.msk.bf16.mxu0 %vm327_vm1, %v2262_v5  ;;  %3768 = vmatprep.mubr.msk.bf16.mxu1 %vm327_vm1, %v2431_v6  ;;  %v2589_v5 = vrot.slane %v2587_v51, 1  ;;  %v2592_v6 = vrot.slane %v2590_v52, 2 }
  0xa7   : > { %v2753_v3 = vrot.slane %v2751_v49, 1  ;;  %v2756_v59 = vrot.slane %v2754_v50, 2 }
  0xa8   : > { %v2593_v2 = vor.u32 %v2592_v6, %v2589_v5 }
  0xa9   : > { %v2757_v16 = vor.u32 %v2756_v59, %v2753_v3 }
  0xab   : > { %v2758_v22 = vsel %vm1875_vm4, %v2748_v60, %v2757_v16 }
  0xad   : > { %3755 = vmatmul.mubr.msk.bf16.vlgmr.msra.gmra.mxu0 %vm327_vm1, %v2264_v19  ;;  %3769 = vmatmul.mubr.msk.bf16.vlgmr.msra.gmra.mxu1 %vm327_vm1, %v2433_v20  ;;  %v2772_v19 = vshll.u32 %v4548_v18, 16  ;;  %v2605_v20 = vshrl.u32 %v3452_v7, 16 }
  0xae   : > { %3781 = vmatpush3.bf16.msra.mxu0 %v2632_v21  ;;  %3795 = vmatpush3.bf16.msra.mxu1 %v2805_v23  ;;  %v2766_v21 = vor.u32 %v2765_v15, %v2762_v14  ;;  %v2608_v23 = vshll.u32 %v3452_v7, 16 }
  0xaf   : > { %3758 = vmatprep.mubr.msk.bf16.mxu0 %vm327_vm1, %v2266_v27  ;;  %3772 = vmatprep.mubr.msk.bf16.mxu1 %vm327_vm1, %v2435_v28  ;;  %v2778_v27 = vshrl.u32 %v3461_v11, 16  ;;  %v2781_v28 = vshll.u32 %v3461_v11, 16  ;;  %v2774_v8 = vrot.slane %v2772_v19, 2  ;;  %v2607_v17 = vrot.slane %v2605_v20, 1 }
  0xb0   : > { %v2767_v33 = vsel %vm1875_vm4, %v2757_v16, %v2766_v21  ;;  %v2610_v9 = vrot.slane %v2608_v23, 2 }
  0xb1   : > { %v2780_v18 = vrot.slane %v2778_v27, 1  ;;  %v2783_v34 = vrot.slane %v2781_v28, 2  ;;  %v2775_v36 = vor.u32 %v2774_v8, %v2771_v32 }
  0xb5   : > { %3759 = vmatmul.mubr.msk.bf16.gmra.mxu0 %vm327_vm1, %v2268_v37  ;;  %3773 = vmatmul.mubr.msk.bf16.gmra.mxu1 %vm327_vm1, %v2437_v38  ;;  %v2611_v37 = vor.u32 %v2610_v9, %v2607_v17  ;;  %v2784_v38 = vor.u32 %v2783_v34, %v2780_v18 }
  0xb6   : > { %3762 = vmatprep.mubr.msk.bf16.mxu0 %vm327_vm1, %v2270_v39  ;;  %3776 = vmatprep.mubr.msk.bf16.mxu1 %vm327_vm1, %v2439_v40  ;;  %v2776_v40 = vsel %vm1875_vm4, %v2766_v21, %v2775_v36 }
  0xb7   : > { %v2785_v42 = vsel %vm1875_vm4, %v2775_v36, %v2784_v38 }
  0xbd   : > { %3763 = vmatmul.mubr.msk.bf16.gmra.mxu0 %vm327_vm1, %v2269_v30  ;;  %3777 = vmatmul.mubr.msk.bf16.gmra.mxu1 %vm327_vm1, %v2438_v26  ;;  %v2594_v30 = vsel %vm1875_vm4, %v2584_v10, %v2593_v2  ;;  %v2598_v26 = vrot.slane %v2596_v4, 1 }
  0xbe   : > { %3782 = vmatprep.mubr.msk.bf16.mxu0 %vm327_vm1, %v2576_v12  ;;  %3796 = vmatprep.mubr.msk.bf16.mxu1 %vm327_vm1, %v2749_v13 }
  0xbf   : > { %v2602_v35 = vor.u32 %v2601_v31, %v2598_v26 }
  0xc1   : > { %v2603_v39 = vsel %vm1875_vm4, %v2593_v2, %v2602_v35  ;;  %v2612_v41 = vsel %vm1875_vm4, %v2602_v35, %v2611_v37 }
  0xc5   : > { %3783 = vmatmul.mubr.msk.bf16.vlgmr.msra.gmra.mxu0 %vm327_vm1, %v2585_v29  ;;  %3797 = vmatmul.mubr.msk.bf16.vlgmr.msra.gmra.mxu1 %vm327_vm1, %v2758_v22 }
  0xc6   : > { %3786 = vmatprep.mubr.msk.bf16.mxu0 %vm327_vm1, %v2594_v30  ;;  %3800 = vmatprep.mubr.msk.bf16.mxu1 %vm327_vm1, %v2767_v33 }
  0xcd   : > { %3787 = vmatmul.mubr.msk.bf16.gmra.mxu0 %vm327_vm1, %v2603_v39  ;;  %3801 = vmatmul.mubr.msk.bf16.gmra.mxu1 %vm327_vm1, %v2776_v40 }
  0xce   : > { %3790 = vmatprep.mubr.msk.bf16.mxu0 %vm327_vm1, %v2612_v41  ;;  %3804 = vmatprep.mubr.msk.bf16.mxu1 %vm327_vm1, %v2785_v42 }
  0xd5   : > { %3791 = vmatmul.mubr.msk.bf16.gmra.mxu0 %vm327_vm1, %v2611_v37  ;;  %3805 = vmatmul.mubr.msk.bf16.gmra.mxu1 %vm327_vm1, %v2784_v38 }
  0xdd   : > { %v3588_v43 = vpop.f32.mrf.mxu0  ;;  %v3602_v44 = vpop.f32.mrf.mxu1 }
  0xde   : > { %v525_v45 = vadd.f32 %v3602_v44, %v3588_v43 }
  0xdf   : > { %v384_v24 = vpop.f32.mrf.mxu0  ;;  %v516_v25 = vpop.f32.mrf.mxu1 }
  0xe0   : > { %v517_v46 = vadd.f32 %v516_v25, %v384_v24 }
  0xe1   : > { %v3589_v47 = vpop.f32.mrf.mxu0  ;;  %v3603_v48 = vpop.f32.mrf.mxu1 }
  0xe2   : > { %v528_v49 = vadd.f32 %v3603_v48, %v3589_v47 }
  0xe3   : > { %v387_v50 = vpop.f32.mrf.mxu0  ;;  %v519_v51 = vpop.f32.mrf.mxu1 }
  0xe4   : > { %v520_v52 = vadd.f32 %v519_v51, %v387_v50 }
  0xe5   : > { %v3592_v53 = vpop.f32.mrf.mxu0  ;;  %v3606_v54 = vpop.f32.mrf.mxu1 }
  0xe6   : > { %v541_v55 = vadd.f32 %v3606_v54, %v3592_v53 }
  0xe7   : > { %v400_v56 = vpop.f32.mrf.mxu0  ;;  %v532_v57 = vpop.f32.mrf.mxu1 }
  0xe8   : > { %v533_v60 = vadd.f32 %v532_v57, %v400_v56 }
  0xe9   : > { %v3593_v61 = vpop.f32.mrf.mxu0  ;;  %v3607_v0 = vpop.f32.mrf.mxu1 }
  0xea   : > { %v544_v58 = vadd.f32 %v3607_v0, %v3593_v61 }
  0xeb   : > { %v403_v1 = vpop.f32.mrf.mxu0  ;;  %v535_v3 = vpop.f32.mrf.mxu1 }
  0xec   : > { %v536_v59 = vadd.f32 %v535_v3, %v403_v1 }
  0xed   : > { %v3596_v5 = vpop.f32.mrf.mxu0  ;;  %v3610_v6 = vpop.f32.mrf.mxu1 }
  0xee   : > { %v557_v7 = vadd.f32 %v3610_v6, %v3596_v5 }
  0xef   : > { %v416_v11 = vpop.f32.mrf.mxu0  ;;  %v548_v12 = vpop.f32.mrf.mxu1 }
  0xf0   : > { %v549_v13 = vadd.f32 %v548_v12, %v416_v11 }
  0xf1   : > { %v3597_v14 = vpop.f32.mrf.mxu0  ;;  %v3611_v15 = vpop.f32.mrf.mxu1 }
  0xf2   : > { %v560_v10 = vadd.f32 %v3611_v15, %v3597_v14 }
  0xf3   : > { %v419_v16 = vpop.f32.mrf.mxu0  ;;  %v551_v2 = vpop.f32.mrf.mxu1 }
  0xf4   : > { %v552_v4 = vadd.f32 %v551_v2, %v419_v16 }
  0xf5   : > { %v3616_v62 = vpop.f32.mrf.mxu0  ;;  %v3630_v63 = vpop.f32.mrf.mxu1 }
  0xf6   : > { %v716_v19 = vadd.f32 %v3616_v62, %v525_v45 }
  0xf7   : > { %v667_v20 = vpop.f32.mrf.mxu0  ;;  %v829_v21 = vpop.f32.mrf.mxu1 }
  0xf8   : > { %v878_v23 = vadd.f32 %v3630_v63, %v716_v19  ;;  %v714_v27 = vadd.f32 %v667_v20, %v517_v46 }
  0xf9   : > { %v3617_v28 = vpop.f32.mrf.mxu0  ;;  %v3631_v29 = vpop.f32.mrf.mxu1 }
  0xfa   : > { %v876_v22 = vadd.f32 %v829_v21, %v714_v27  ;;  %v717_v30 = vadd.f32 %v3617_v28, %v528_v49 }
  0xfb   : > { %v670_v26 = vpop.f32.mrf.mxu0  ;;  %v832_v31 = vpop.f32.mrf.mxu1 }
  0xfc   : > { %v879_v32 = vadd.f32 %v3631_v29, %v717_v30  ;;  %v715_v8 = vadd.f32 %v670_v26, %v520_v52 }
  0xfd   : > { %v3620_v17 = vpop.f32.mrf.mxu0  ;;  %v3634_v33 = vpop.f32.mrf.mxu1 }
  0xfe   : > { %v877_v9 = vadd.f32 %v832_v31, %v715_v8  ;;  %v720_v18 = vadd.f32 %v3620_v17, %v541_v55 }
  0xff   : > { %v683_v34 = vpop.f32.mrf.mxu0  ;;  %v845_v35 = vpop.f32.mrf.mxu1 }
 0x100   : > { %v882_v36 = vadd.f32 %v3634_v33, %v720_v18  ;;  %v718_v37 = vadd.f32 %v683_v34, %v533_v60 }
 0x101   : > { %v3621_v38 = vpop.f32.mrf.mxu0  ;;  %v3635_v39 = vpop.f32.mrf.mxu1 }
 0x102   : > { %v880_v40 = vadd.f32 %v845_v35, %v718_v37  ;;  %v721_v41 = vadd.f32 %v3621_v38, %v544_v58 }
 0x103   : > { %v686_v42 = vpop.f32.mrf.mxu0  ;;  %v848_v43 = vpop.f32.mrf.mxu1 }
 0x104   : > { %v883_v44 = vadd.f32 %v3635_v39, %v721_v41  ;;  %v719_v45 = vadd.f32 %v686_v42, %v536_v59 }
 0x105   : > { %v3624_v24 = vpop.f32.mrf.mxu0  ;;  %v3638_v25 = vpop.f32.mrf.mxu1 }
 0x106   : > { %v881_v46 = vadd.f32 %v848_v43, %v719_v45  ;;  %v724_v47 = vadd.f32 %v3624_v24, %v557_v7 }
 0x107   : > { %v699_v48 = vpop.f32.mrf.mxu0  ;;  %v861_v49 = vpop.f32.mrf.mxu1 }
 0x108   : > { %v886_v50 = vadd.f32 %v3638_v25, %v724_v47  ;;  %v722_v51 = vadd.f32 %v699_v48, %v549_v13 }
 0x109   : > { %v3625_v52 = vpop.f32.mrf.mxu0  ;;  %v3639_v53 = vpop.f32.mrf.mxu1 }
 0x10a   : > { %v884_v54 = vadd.f32 %v861_v49, %v722_v51  ;;  %v725_v55 = vadd.f32 %v3625_v52, %v560_v10 }
 0x10b   : > { %v702_v56 = vpop.f32.mrf.mxu0  ;;  %v864_v57 = vpop.f32.mrf.mxu1 }
 0x10c   : > { %v887_v60 = vadd.f32 %v3639_v53, %v725_v55  ;;  %v723_v61 = vadd.f32 %v702_v56, %v552_v4 }
 0x10d   : > { %v3644_v0 = vpop.f32.mrf.mxu0  ;;  %v3658_v58 = vpop.f32.mrf.mxu1 }
 0x10e   : > { %v885_v1 = vadd.f32 %v864_v57, %v723_v61  ;;  %v1037_v3 = vadd.f32 %v3644_v0, %v878_v23 }
 0x10f   : > { %v988_v59 = vpop.f32.mrf.mxu0  ;;  %v1147_v5 = vpop.f32.mrf.mxu1 }
 0x110   : > { %v1196_v6 = vadd.f32 %v3658_v58, %v1037_v3  ;;  %v1035_v7 = vadd.f32 %v988_v59, %v876_v22 }
 0x111   : > { %v3645_v11 = vpop.f32.mrf.mxu0  ;;  %v3659_v12 = vpop.f32.mrf.mxu1 }
 0x112   : > { %v1194_v14 = vadd.f32 %v1147_v5, %v1035_v7  ;;  %v1038_v13 = vadd.f32 %v3645_v11, %v879_v32 }
 0x113   : > { %v991_v15 = vpop.f32.mrf.mxu0  ;;  %v1150_v16 = vpop.f32.mrf.mxu1 }
 0x114   : > { %v1197_v2 = vadd.f32 %v3659_v12, %v1038_v13  ;;  %v1036_v10 = vadd.f32 %v991_v15, %v877_v9 }
 0x115   : > { %v3648_v62 = vpop.f32.mrf.mxu0  ;;  %v3662_v63 = vpop.f32.mrf.mxu1 }
 0x116   : > { %v1195_v19 = vadd.f32 %v1150_v16, %v1036_v10  ;;  %v1041_v4 = vadd.f32 %v3648_v62, %v882_v36 }
 0x117   : > { %v1004_v20 = vpop.f32.mrf.mxu0  ;;  %v1163_v21 = vpop.f32.mrf.mxu1 }
 0x118   : > { %v1200_v27 = vadd.f32 %v3662_v63, %v1041_v4  ;;  %v1039_v23 = vadd.f32 %v1004_v20, %v880_v40 }
 0x119   : > { %v3649_v28 = vpop.f32.mrf.mxu0  ;;  %v3663_v29 = vpop.f32.mrf.mxu1 }
 0x11a   : > { %v1198_v30 = vadd.f32 %v1163_v21, %v1039_v23  ;;  %v1042_v22 = vadd.f32 %v3649_v28, %v883_v44 }
 0x11b   : > { %v1007_v26 = vpop.f32.mrf.mxu0  ;;  %v1166_v31 = vpop.f32.mrf.mxu1 }
 0x11c   : > { %v1201_v8 = vadd.f32 %v3663_v29, %v1042_v22  ;;  %v1040_v32 = vadd.f32 %v1007_v26, %v881_v46 }
 0x11d   : > { %v3652_v17 = vpop.f32.mrf.mxu0  ;;  %v3666_v33 = vpop.f32.mrf.mxu1 }
 0x11e   : > { %v1199_v18 = vadd.f32 %v1166_v31, %v1040_v32  ;;  %v1045_v9 = vadd.f32 %v3652_v17, %v886_v50 }
 0x11f   : > { %v1020_v34 = vpop.f32.mrf.mxu0  ;;  %v1179_v35 = vpop.f32.mrf.mxu1 }
 0x120   : > { %v1204_v37 = vadd.f32 %v3666_v33, %v1045_v9  ;;  %v1043_v36 = vadd.f32 %v1020_v34, %v884_v54 }
 0x121   : > { %v3653_v38 = vpop.f32.mrf.mxu0  ;;  %v3667_v39 = vpop.f32.mrf.mxu1 }
 0x122   : > { %v1202_v41 = vadd.f32 %v1179_v35, %v1043_v36  ;;  %v1046_v40 = vadd.f32 %v3653_v38, %v887_v60 }
 0x123   : > { %v1023_v42 = vpop.f32.mrf.mxu0  ;;  %v1182_v43 = vpop.f32.mrf.mxu1 }
 0x124   : > { %v1205_v45 = vadd.f32 %v3667_v39, %v1046_v40  ;;  %v1044_v44 = vadd.f32 %v1023_v42, %v885_v1 }
 0x125   : > { %v3672_v24 = vpop.f32.mrf.mxu0  ;;  %v3686_v25 = vpop.f32.mrf.mxu1 }
 0x126   : > { %v1203_v47 = vadd.f32 %v1182_v43, %v1044_v44  ;;  %v1358_v46 = vadd.f32 %v3672_v24, %v1196_v6 }
 0x127   : > { %v1309_v48 = vpop.f32.mrf.mxu0  ;;  %v1471_v49 = vpop.f32.mrf.mxu1 }
 0x128   : > { %v4618_v51 = vadd.f32 %v3686_v25, %v1358_v46  ;;  %v1356_v50 = vadd.f32 %v1309_v48, %v1194_v14 }
 0x129   : > { %v3673_v52 = vpop.f32.mrf.mxu0  ;;  %v3687_v53 = vpop.f32.mrf.mxu1 }
 0x12a   : > { %v4620_v54 = vadd.f32 %v1471_v49, %v1356_v50  ;;  %v1359_v55 = vadd.f32 %v3673_v52, %v1197_v2 }
 0x12b   : > { %v1312_v56 = vpop.f32.mrf.mxu0  ;;  %v1474_v57 = vpop.f32.mrf.mxu1 }
 0x12c   : > { %v4622_v60 = vadd.f32 %v3687_v53, %v1359_v55  ;;  %v1357_v61 = vadd.f32 %v1312_v56, %v1195_v19 }
 0x12d   : > { %v3676_v0 = vpop.f32.mrf.mxu0  ;;  %v3690_v58 = vpop.f32.mrf.mxu1 }
 0x12e   : > { %v4624_v1 = vadd.f32 %v1474_v57, %v1357_v61  ;;  %v1362_v3 = vadd.f32 %v3676_v0, %v1200_v27 }
 0x12f   : > { %v1325_v59 = vpop.f32.mrf.mxu0  ;;  %v1487_v5 = vpop.f32.mrf.mxu1 }
 0x130   : > { %v4626_v6 = vadd.f32 %v3690_v58, %v1362_v3  ;;  %v1360_v7 = vadd.f32 %v1325_v59, %v1198_v30 }
 0x131   : > { %v3677_v11 = vpop.f32.mrf.mxu0  ;;  %v3691_v12 = vpop.f32.mrf.mxu1 }
 0x132   : > { %v4628_v14 = vadd.f32 %v1487_v5, %v1360_v7  ;;  %v1363_v13 = vadd.f32 %v3677_v11, %v1201_v8 }
 0x133   : > { %v1328_v15 = vpop.f32.mrf.mxu0  ;;  %v1490_v16 = vpop.f32.mrf.mxu1 }
 0x134   : > { %v4630_v2 = vadd.f32 %v3691_v12, %v1363_v13  ;;  %v1361_v10 = vadd.f32 %v1328_v15, %v1199_v18 }
 0x135   : > { %v3680_v62 = vpop.f32.mrf.mxu0  ;;  %v3694_v63 = vpop.f32.mrf.mxu1 }
 0x136   : > { %v4632_v19 = vadd.f32 %v1490_v16, %v1361_v10  ;;  %v1366_v4 = vadd.f32 %v3680_v62, %v1204_v37 }
 0x137   : > { %v1341_v20 = vpop.f32.mrf.mxu0  ;;  %v1503_v21 = vpop.f32.mrf.mxu1 }
 0x138   : > { %v4634_v27 = vadd.f32 %v3694_v63, %v1366_v4  ;;  %v1364_v23 = vadd.f32 %v1341_v20, %v1202_v41 }
 0x139   : > { %v3681_v28 = vpop.f32.mrf.mxu0  ;;  %v3695_v29 = vpop.f32.mrf.mxu1 }
 0x13a   : > { %v4636_v30 = vadd.f32 %v1503_v21, %v1364_v23  ;;  %v1367_v22 = vadd.f32 %v3681_v28, %v1205_v45 }
 0x13b   : > { %v1344_v26 = vpop.f32.mrf.mxu0  ;;  %v1506_v31 = vpop.f32.mrf.mxu1 }
 0x13c   : > { %v4638_v8 = vadd.f32 %v3695_v29, %v1367_v22  ;;  %v1365_v32 = vadd.f32 %v1344_v26, %v1203_v47 }
 0x13d   : > { %v3700_v17 = vpop.f32.mrf.mxu0  ;;  %v3714_v33 = vpop.f32.mrf.mxu1 }
 0x13e   : > { %v4640_v18 = vadd.f32 %v1506_v31, %v1365_v32 }
 0x13f   : > { %v1641_v9 = vpop.f32.mrf.mxu0  ;;  %v4642_v34 = vpop.f32.mrf.mxu1 }
 0x141   : > { %v3701_v35 = vpop.f32.mrf.mxu0  ;;  %v4644_v37 = vpop.f32.mrf.mxu1 }
 0x143   : > { %v1644_v36 = vpop.f32.mrf.mxu0  ;;  %v4646_v38 = vpop.f32.mrf.mxu1 }
 0x145   : > { %v3704_v39 = vpop.f32.mrf.mxu0  ;;  %v4648_v41 = vpop.f32.mrf.mxu1 }
 0x147   : > { %v4650_v40 = vpop.f32.mrf.mxu0  ;;  %v4652_v42 = vpop.f32.mrf.mxu1 }
 0x149   : > { %v4654_v43 = vpop.f32.mrf.mxu0  ;;  %v4656_v45 = vpop.f32.mrf.mxu1 }
 0x14b   : > { %v4658_v44 = vpop.f32.mrf.mxu0  ;;  %v4660_v24 = vpop.f32.mrf.mxu1 }
 0x14d   : > { %v4662_v25 = vpop.f32.mrf.mxu0  ;;  %v4664_v47 = vpop.f32.mrf.mxu1 }
 0x14f   : > { %v4666_v46 = vpop.f32.mrf.mxu0  ;;  %v4668_v48 = vpop.f32.mrf.mxu1 }
 0x150   : > { %4902 = vst [vmem:[#allocation5_spill] sm:$0xff] %v4668_v48 }
 0x151   : > { %v4670_v49 = vpop.f32.mrf.mxu0  ;;  %v4672_v50 = vpop.f32.mrf.mxu1 }
 0x152   : > { %4903 = vst [vmem:[#allocation6_spill] sm:$0xff] %v4672_v50  ;;  %v1691_v50 = vadd.f32 %v3701_v35, %v4622_v60  ;;  %v1692_v60 = vadd.f32 %v4650_v40, %v4628_v14 }
 0x153   : > { %v4674_v52 = vpop.f32.mrf.mxu0  ;;  %v4676_v53 = vpop.f32.mrf.mxu1 }
 0x154   : > { %4904 = vst [vmem:[#allocation7_spill] sm:$0xff] %v4676_v53 }
 0x155   : > { %v3728_v55 = vpop.f32.mrf.mxu0  ;;  %v3742_v56 = vpop.f32.mrf.mxu1 }
 0x157   : > { %v1984_v57 = vpop.f32.mrf.mxu0  ;;  %v2157_v61 = vpop.f32.mrf.mxu1 }
 0x159   : > { %v3729_v0 = vpop.f32.mrf.mxu0  ;;  %v4678_v58 = vpop.f32.mrf.mxu1 }
 0x15b   : > { %v1987_v3 = vpop.f32.mrf.mxu0  ;;  %v4680_v59 = vpop.f32.mrf.mxu1 }
 0x15d   : > { %v3732_v5 = vpop.f32.mrf.mxu0  ;;  %v4682_v7 = vpop.f32.mrf.mxu1 }
 0x15f   : > { %v4684_v11 = vpop.f32.mrf.mxu0  ;;  %v4686_v12 = vpop.f32.mrf.mxu1 }
 0x161   : > { %v4688_v13 = vpop.f32.mrf.mxu0  ;;  %v4690_v15 = vpop.f32.mrf.mxu1 }
 0x162   : > { %4905 = vst [vmem:[#allocation8_spill] sm:$0xff] %v4690_v15 }
 0x163   : > { %v4692_v16 = vpop.f32.mrf.mxu0  ;;  %v4694_v10 = vpop.f32.mrf.mxu1 }
 0x164   : > { %4906 = vst [vmem:[#allocation9_spill] sm:$0xff] %v4694_v10 }
 0x165   : > { %v4696_v62 = vpop.f32.mrf.mxu0  ;;  %v4698_v63 = vpop.f32.mrf.mxu1 }
 0x166   : > { %4907 = vst [vmem:[#allocation10_spill] sm:$0xff] %v4696_v62  ;;  %4908 = vst [vmem:[#allocation11_spill] sm:$0xff] %v4698_v63 }
 0x167   : > { %v4700_v4 = vpop.f32.mrf.mxu0  ;;  %v4702_v20 = vpop.f32.mrf.mxu1 }
 0x168   : > { %4909 = vst [vmem:[#allocation12_spill] sm:$0xff] %v4700_v4  ;;  %4910 = vst [vmem:[#allocation13_spill] sm:$0xff] %v4702_v20  ;;  %v1690_v20 = vadd.f32 %v3700_v17, %v4618_v51  ;;  %v1689_v51 = vadd.f32 %v1644_v36, %v4624_v1 }
 0x169   : > { %v4704_v21 = vpop.f32.mrf.mxu0  ;;  %v4706_v23 = vpop.f32.mrf.mxu1 }
 0x16a   : > { %4911 = vst [vmem:[#allocation14_spill] sm:$0xff] %v4704_v21  ;;  %4912 = vst [vmem:[#allocation15_spill] sm:$0xff] %v4706_v23  ;;  %v1688_v23 = vadd.f32 %v1641_v9, %v4620_v54  ;;  %v1859_v62 = vadd.f32 %v3714_v33, %v1690_v20  ;;  %v1860_v9 = vadd.f32 %v4644_v37, %v1691_v50 }
 0x16b   : > { %v4708_v28 = vpop.f32.mrf.mxu0  ;;  %v4710_v29 = vpop.f32.mrf.mxu1  ;;  %v1695_v37 = vadd.f32 %v4654_v43, %v4630_v2 }
 0x16c   : > { %4913 = vst [vmem:[#allocation16_spill] sm:$0xff] %v4708_v28  ;;  %4914 = vst [vmem:[#allocation17_spill] sm:$0xff] %v4710_v29  ;;  %v2033_v17 = vadd.f32 %v3728_v55, %v1859_v62  ;;  %v2034_v36 = vadd.f32 %v3729_v0, %v1860_v9 }
 0x16d   : > { %v3756_v22 = vpop.f32.mrf.mxu0  ;;  %v3770_v26 = vpop.f32.mrf.mxu1 }
 0x16e   : > { %v2206_v1 = vadd.f32 %v3742_v56, %v2033_v17  ;;  %v2207_v2 = vadd.f32 %v4678_v58, %v2034_v36 }
 0x16f   : > { %v2326_v31 = vpop.f32.mrf.mxu0  ;;  %v2495_v32 = vpop.f32.mrf.mxu1 }
 0x170   : > { %v2375_v40 = vadd.f32 %v3756_v22, %v2206_v1 }
 0x171   : > { %v3757_v10 = vpop.f32.mrf.mxu0  ;;  %v4712_v15 = vpop.f32.mrf.mxu1 }
 0x172   : > { %4915 = vst [vmem:[#allocation18_spill] sm:$0xff] %v4712_v15 }
 0x173   : > { %v2329_v63 = vpop.f32.mrf.mxu0  ;;  %v4714_v53 = vpop.f32.mrf.mxu1 }
 0x174   : > { %4916 = vst [vmem:[#allocation19_spill] sm:$0xff] %v4714_v53  ;;  %v1857_v53 = vadd.f32 %v4642_v34, %v1688_v23  ;;  %v1858_v34 = vadd.f32 %v4646_v38, %v1689_v51  ;;  %v1693_v38 = vadd.f32 %v4658_v44, %v4632_v19  ;;  %v1864_v19 = vadd.f32 %v4656_v45, %v1695_v37 }
 0x175   : > { %v4717_v4 = vpop.f32.mrf.mxu0  ;;  %v4719_v21 = vpop.f32.mrf.mxu1  ;;  %v2544_v44 = vadd.f32 %v3770_v26, %v2375_v40 }
 0x176   : > { %4917 = vst [vmem:[#allocation20_spill] sm:$0xff] %v4717_v4  ;;  %4918 = vst [vmem:[#allocation21_spill] sm:$0xff] %v4719_v21  ;;  %v1694_v21 = vadd.f32 %v3704_v39, %v4626_v6  ;;  %v2031_v33 = vadd.f32 %v1984_v57, %v1857_v53  ;;  %v2032_v14 = vadd.f32 %v1987_v3, %v1858_v34  ;;  %v4753_v53 = vpop.permute.xlu1 %2936  ;;  %v2927_v3 = vpop.permute.xlu0 %2926 }
 0x177   : > { %v4722_v28 = vpop.f32.mrf.mxu0  ;;  %v4724_v29 = vpop.f32.mrf.mxu1  ;;  %v1861_v57 = vadd.f32 %v4652_v42, %v1692_v60  ;;  %v1862_v23 = vadd.f32 %v4660_v24, %v1693_v38  ;;  %v1697_v24 = vadd.f32 %v4674_v52, %v4640_v18  ;;  %v4923_v60 = vld [vmem:[#allocation10_spill] sm:$0xff] }
 0x178   : > { %v1863_v6 = vadd.f32 %v4648_v41, %v1694_v21  ;;  %v2204_v50 = vadd.f32 %v2157_v61, %v2031_v33  ;;  %v1698_v41 = vadd.f32 %v4662_v25, %v4634_v27  ;;  %v2205_v27 = vadd.f32 %v4680_v59, %v2032_v14  ;;  %v4922_v33 = vld [vmem:[#allocation6_spill] sm:$0xff] }
 0x179   : > { %v4727_v48 = vpop.f32.mrf.mxu0  ;;  %v4729_v15 = vpop.f32.mrf.mxu1  ;;  %v2035_v62 = vadd.f32 %v4684_v11, %v1861_v57  ;;  %v2376_v25 = vadd.f32 %v3757_v10, %v2207_v2  ;;  %v1699_v11 = vadd.f32 %v4670_v49, %v4638_v8  ;;  %v2038_v10 = vadd.f32 %v4688_v13, %v1864_v19  ;;  %v4919_v49 = vld [vmem:[#allocation18_spill] sm:$0xff]  ;;  %v4925_v57 = vld [vmem:[#allocation7_spill] sm:$0xff] }
 0x17a   : > { %v2037_v43 = vadd.f32 %v3732_v5, %v1863_v6  ;;  %v2373_v61 = vadd.f32 %v2326_v31, %v2204_v50  ;;  %v1867_v58 = vadd.f32 %v4664_v47, %v1698_v41  ;;  %v1696_v5 = vadd.f32 %v4666_v46, %v4636_v30  ;;  %v4780_v9 = vpop.permute.xlu1 %2941  ;;  %v4926_v41 = vld [vmem:[#allocation8_spill] sm:$0xff] }
 0x17b   : > { %v4734_v4 = vpop.f32.mrf.mxu0  ;;  %v4736_v54 = vpop.f32.mrf.mxu1  ;;  %v2374_v45 = vadd.f32 %v2329_v63, %v2205_v27  ;;  %v2208_v47 = vadd.f32 %v4686_v12, %v2035_v62  ;;  %v2036_v30 = vadd.f32 %v4692_v16, %v1862_v23  ;;  %v4921_v12 = vld [vmem:[#allocation5_spill] sm:$0xff]  ;;  %v1868_v16 = vadd.f32 %v4922_v33, %v1699_v11  ;;  %v4924_v6 = vld [vmem:[#allocation19_spill] sm:$0xff]  ;;  %v4928_v62 = vld [vmem:[#allocation14_spill] sm:$0xff] }
 0x17c   : > { %v2210_v51 = vadd.f32 %v4682_v7, %v2037_v43  ;;  %v2542_v17 = vadd.f32 %v2495_v32, %v2373_v61  ;;  %v2545_v7 = vadd.f32 %v4919_v49, %v2376_v25  ;;  %v2932_v32 = vpop.permute.xlu0 %2931  ;;  %v1865_v13 = vadd.f32 %v4921_v12, %v1696_v5  ;;  %v4927_v43 = vld [vmem:[#allocation12_spill] sm:$0xff]  ;;  %v4929_v25 = vld [vmem:[#allocation9_spill] sm:$0xff] }
 0x17d   : > { %v4741_v35 = vpop.f32.mrf.mxu0  ;;  %v4743_v20 = vpop.f32.mrf.mxu1  ;;  %v4920_v63 = vld [vmem:[#allocation20_spill] sm:$0xff]  ;;  %v2041_v34 = vadd.f32 %v4923_v60, %v1867_v58  ;;  %v2543_v37 = vadd.f32 %v4924_v6, %v2374_v45  ;;  %v2377_v50 = vadd.f32 %v4722_v28, %v2208_v47  ;;  %v1866_v38 = vadd.f32 %v4925_v57, %v1697_v24  ;;  %v4930_v58 = vld [vmem:[#allocation21_spill] sm:$0xff] }
 0x17e   : > { %v2379_v26 = vadd.f32 %v4920_v63, %v2210_v51  ;;  %v2211_v2 = vadd.f32 %v4926_v41, %v2038_v10  ;;  %v2039_v61 = vadd.f32 %v4927_v43, %v1865_v13  ;;  %v2042_v19 = vadd.f32 %v4928_v62, %v1868_v16  ;;  %v4809_v28 = vpop.permute.xlu1 %2951 }
 0x17f   : > { %v4747_v39 = vpop.f32.mrf.mxu0  ;;  %v4749_v55 = vpop.f32.mrf.mxu1  ;;  %v2209_v23 = vadd.f32 %v4929_v25, %v2036_v30 }
 0x180   : > { %v2548_v5 = vadd.f32 %v4930_v58, %v2379_v26  ;;  %v2947_v30 = vpop.permute.xlu0 %2946  ;;  %v4934_v26 = vld [vmem:[#allocation15_spill] sm:$0xff] }
 0x181   : > { %v4760_v56 = vpop.f32.mrf.mxu0  ;;  %v4762_v0 = vpop.f32.mrf.mxu1  ;;  %v2378_v12 = vadd.f32 %v4734_v4, %v2209_v23 }
 0x183   : > { %v4766_v21 = vpop.f32.mrf.mxu0  ;;  %v4768_v42 = vpop.f32.mrf.mxu1 }
 0x184   : > { %v2957_v43 = vpop.permute.xlu0 %2956 }
 0x185   : > { %v3784_v22 = vpop.f32.mrf.mxu0  ;;  %v3798_v31 = vpop.f32.mrf.mxu1 }
 0x186   : > { %v2717_v59 = vadd.f32 %v3784_v22, %v2544_v44 }
 0x187   : > { %v2668_v8 = vpop.f32.mrf.mxu0  ;;  %v2841_v46 = vpop.f32.mrf.mxu1 }
 0x188   : > { %v4794_v18 = vadd.f32 %v3798_v31, %v2717_v59  ;;  %v2715_v52 = vadd.f32 %v2668_v8, %v2542_v17  ;;  %v4931_v31 = vld [vmem:[#allocation11_spill] sm:$0xff]  ;;  %v4932_v17 = vld [vmem:[#allocation16_spill] sm:$0xff]  ;;  %v2380_v59 = vadd.f32 %v4727_v48, %v2211_v2  ;;  %v2546_v8 = vadd.f32 %v4724_v29, %v2377_v50  ;;  %v2962_v50 = vpop.permute.xlu1 %2961 }
 0x189   : > { %v3785_v1 = vpop.f32.mrf.mxu0  ;;  %v3799_v36 = vpop.f32.mrf.mxu1  ;;  %v2214_v51 = vadd.f32 %v4931_v31, %v2041_v34  ;;  %v2040_v45 = vadd.f32 %v4932_v17, %v1866_v38  ;;  %v4935_v34 = vld [vmem:[#allocation17_spill] sm:$0xff]  ;;  %v2547_v38 = vadd.f32 %v4736_v54, %v2378_v12 }
 0x18a   : > { %2902 = vst [vmem:[%s4790_s7 + $0x10] sm:$0xff] %v4794_v18  ;;  %v2888_v14 = vadd.f32 %v2841_v46, %v2715_v52  ;;  %v2718_v40 = vadd.f32 %v3785_v1, %v2545_v7  ;;  %v4933_v7 = vld [vmem:[#allocation13_spill] sm:$0xff]  ;;  %v2215_v52 = vadd.f32 %v4934_v26, %v2042_v19 }
 0x18b   : > { %v2671_v27 = vpop.f32.mrf.mxu0  ;;  %v2844_v44 = vpop.f32.mrf.mxu1  ;;  %v2212_v63 = vadd.f32 %v4933_v7, %v2039_v61  ;;  %v2383_v13 = vadd.f32 %v4741_v35, %v2214_v51  ;;  %v2213_v1 = vadd.f32 %v4935_v34, %v2040_v45 }
 0x18c   : > { %2900 = vst [vmem:[%s4790_s7] sm:$0xff] %v2888_v14  ;;  %v2891_v11 = vadd.f32 %v3799_v36, %v2718_v40  ;;  %v2716_v22 = vadd.f32 %v2671_v27, %v2543_v37  ;;  %v2984_v24 = vmul.f32 %v2927_v3, %v2888_v14  ;;  %v2986_v3 = vmul.f32 %v4753_v53, %v4794_v18 }
 0x18d   : > { %v3788_v47 = vpop.f32.mrf.mxu0  ;;  %v3802_v10 = vpop.f32.mrf.mxu1  ;;  %v2549_v36 = vadd.f32 %v4729_v15, %v2380_v59  ;;  %v2381_v6 = vadd.f32 %v4747_v39, %v2212_v63  ;;  %v2552_v41 = vadd.f32 %v4743_v20, %v2383_v13  ;;  %v2384_v15 = vadd.f32 %v4760_v56, %v2215_v52 }
 0x18e   : > { %2903 = vst [vmem:[%s4790_s7 + $0x18] sm:$0xff] %v2891_v11  ;;  %v2889_v46 = vadd.f32 %v2844_v44, %v2716_v22  ;;  %v2721_v49 = vadd.f32 %v3788_v47, %v2548_v5  ;;  %v3015_v4 = vmul.f32 %v2984_v24, %v2888_v14  ;;  %v2987_v40 = vmul.f32 %v4780_v9, %v2891_v11 }
 0x18f   : > { %v2684_v33 = vpop.f32.mrf.mxu0  ;;  %v2857_v48 = vpop.f32.mrf.mxu1  ;;  %v3017_v61 = vmul.f32 %v2986_v3, %v4794_v18  ;;  %v2550_v27 = vadd.f32 %v4749_v55, %v2381_v6  ;;  %v2382_v44 = vadd.f32 %v4766_v21, %v2213_v1  ;;  %v2553_v18 = vadd.f32 %v4762_v0, %v2384_v15 }
 0x190   : > { %2901 = vst [vmem:[%s4790_s7 + $0x8] sm:$0xff] %v2889_v46  ;;  %v2985_v29 = vmul.f32 %v2932_v32, %v2889_v46  ;;  %v4824_v16 = vadd.f32 %v3802_v10, %v2721_v49  ;;  %v2719_v60 = vadd.f32 %v2684_v33, %v2546_v8  ;;  %v3018_v56 = vmul.f32 %v2987_v40, %v2891_v11  ;;  %v2972_v55 = vpop.permute.xlu1 %2971 }
 0x191   : > { %v3789_v37 = vpop.f32.mrf.mxu0  ;;  %v3803_v35 = vpop.f32.mrf.mxu1  ;;  %v2551_v0 = vadd.f32 %v4768_v42, %v2382_v44 }
 0x192   : > { %v2996_v57 = vadd.f32 %v2985_v29, %v2984_v24  ;;  %v3016_v53 = vmul.f32 %v2985_v29, %v2889_v46  ;;  %2906 = vst [vmem:[%s4790_s7 + $0x30] sm:$0xff] %v4824_v16  ;;  %v2892_v32 = vadd.f32 %v2857_v48, %v2719_v60  ;;  %v2722_v2 = vadd.f32 %v3789_v37, %v2549_v36  ;;  %v2967_v46 = vpop.permute.xlu0 %2966 }
 0x193   : > { %v2687_v39 = vpop.f32.mrf.mxu0  ;;  %v2860_v14 = vpop.f32.mrf.mxu1  ;;  %v2990_v11 = vmul.f32 %v2957_v43, %v4824_v16 }
 0x194   : > { %v2997_v62 = vadd.f32 %v2996_v57, %v2986_v3  ;;  %v3027_v9 = vadd.f32 %v3016_v53, %v3015_v4  ;;  %2904 = vst [vmem:[%s4790_s7 + $0x20] sm:$0xff] %v2892_v32  ;;  %v2988_v19 = vmul.f32 %v2947_v30, %v2892_v32  ;;  %v2895_v54 = vadd.f32 %v3803_v35, %v2722_v2  ;;  %v2982_v1 = vpop.permute.xlu1 %2981 }
 0x195   : > { %v2720_v25 = vadd.f32 %v2687_v39, %v2547_v38  ;;  %v3792_v20 = vpop.f32.mrf.mxu0  ;;  %v3806_v23 = vpop.f32.mrf.mxu1 }
 0x196   : > { %v3028_v58 = vadd.f32 %v3027_v9, %v3017_v61  ;;  %v2998_v5 = vadd.f32 %v2997_v62, %v2987_v40  ;;  %v2725_v22 = vadd.f32 %v3792_v20, %v2552_v41  ;;  %v3019_v31 = vmul.f32 %v2988_v19, %v2892_v32  ;;  %2907 = vst [vmem:[%s4790_s7 + $0x38] sm:$0xff] %v2895_v54  ;;  %v2977_v37 = vpop.permute.xlu0 %2976 }
 0x197   : > { %v2893_v51 = vadd.f32 %v2860_v14, %v2720_v25  ;;  %v2700_v17 = vpop.f32.mrf.mxu0  ;;  %v2873_v45 = vpop.f32.mrf.mxu1  ;;  %v2991_v26 = vmul.f32 %v2962_v50, %v2895_v54 }
 0x198   : > { %v2999_v59 = vadd.f32 %v2998_v5, %v2988_v19  ;;  %v3029_v21 = vadd.f32 %v3028_v58, %v3018_v56  ;;  %v2898_v24 = vadd.f32 %v3806_v23, %v2725_v22  ;;  %v2723_v47 = vadd.f32 %v2700_v17, %v2550_v27 }
 0x199   : > { %2905 = vst [vmem:[%s4790_s7 + $0x28] sm:$0xff] %v2893_v51  ;;  %v2989_v10 = vmul.f32 %v4809_v28, %v2893_v51  ;;  %v3793_v8 = vpop.f32.mrf.mxu0  ;;  %v3807_v30 = vpop.f32.mrf.mxu1  ;;  %v3021_v28 = vmul.f32 %v2990_v11, %v4824_v16  ;;  %v3022_v36 = vmul.f32 %v2991_v26, %v2895_v54 }
 0x19a   : > { %v3030_v49 = vadd.f32 %v3029_v21, %v3019_v31  ;;  %2910 = vst [vmem:[%s4790_s7 + $0x50] sm:$0xff] %v2898_v24  ;;  %v2896_v7 = vadd.f32 %v2873_v45, %v2723_v47  ;;  %v2726_v63 = vadd.f32 %v3793_v8, %v2553_v18  ;;  %v2994_v40 = vmul.f32 %v2977_v37, %v2898_v24 }
 0x19b   : > { %v3000_v52 = vadd.f32 %v2999_v59, %v2989_v10  ;;  %v3020_v12 = vmul.f32 %v2989_v10, %v2893_v51  ;;  %v2703_v13 = vpop.f32.mrf.mxu0  ;;  %v2876_v42 = vpop.f32.mrf.mxu1 }
 0x19c   : > { %2908 = vst [vmem:[%s4790_s7 + $0x40] sm:$0xff] %v2896_v7  ;;  %v2899_v33 = vadd.f32 %v3807_v30, %v2726_v63  ;;  %v2724_v48 = vadd.f32 %v2703_v13, %v2551_v0  ;;  %v2992_v60 = vmul.f32 %v2967_v46, %v2896_v7  ;;  %v3025_v2 = vmul.f32 %v2994_v40, %v2898_v24 }
 0x19d   : > { %v3001_v3 = vadd.f32 %v3000_v52, %v2990_v11  ;;  %v3031_v29 = vadd.f32 %v3030_v49, %v3020_v12 }
 0x19e   : > { %2911 = vst [vmem:[%s4790_s7 + $0x58] sm:$0x3] %v2899_v33  ;;  %v2897_v34 = vadd.f32 %v2876_v42, %v2724_v48  ;;  %v2995_v35 = vmul.f32 %v2982_v1, %v2899_v33  ;;  %v3023_v53 = vmul.f32 %v2992_v60, %v2896_v7 }
 0x19f   : > { %v3032_v6 = vadd.f32 %v3031_v29, %v3021_v28  ;;  %v3002_v4 = vadd.f32 %v3001_v3, %v2991_v26 }
 0x1a0   : > { %2909 = vst [vmem:[%s4790_s7 + $0x48] sm:$0xff] %v2897_v34  ;;  %v2993_v50 = vmul.f32 %v2972_v55, %v2897_v34  ;;  %v3026_v15 = vmul.f32 %v2995_v35, %v2899_v33  ;;  %v3007_v43 = vsel %vm3006_vm5, %v2995_v35, 0.0 }
 0x1a1   : > { %v3003_v57 = vadd.f32 %v3002_v4, %v2992_v60  ;;  %v3033_v32 = vadd.f32 %v3032_v6, %v3022_v36 }
 0x1a2   : > { %v3024_v16 = vmul.f32 %v2993_v50, %v2897_v34  ;;  %v3037_v9 = vsel %vm3006_vm5, %v3026_v15, 0.0 }
 0x1a3   : > { %v3034_v38 = vadd.f32 %v3033_v32, %v3023_v53  ;;  %v3004_v41 = vadd.f32 %v3003_v57, %v2993_v50 }
 0x1a5   : > { %v3005_v39 = vadd.f32 %v3004_v41, %v2994_v40  ;;  %v3035_v14 = vadd.f32 %v3034_v38, %v3024_v16 }
 0x1a7   : > { %v3008_v61 = vadd.f32 %v3007_v43, %v3005_v39  ;;  %v3036_v62 = vadd.f32 %v3035_v14, %v3025_v2 }
 0x1a9   : > { %v3009_v19 = vrot.slane %v3008_v61, 4  ;;  %v3038_v27 = vadd.f32 %v3037_v9, %v3036_v62 }
 0x1ab   : > { %v3039_v44 = vrot.slane %v3038_v27, 4  ;;  %v3010_v54 = vadd.f32 %v3009_v19, %v3008_v61 }
 0x1ad   : > { %v3011_v25 = vrot.slane %v3010_v54, 2  ;;  %v3040_v20 = vadd.f32 %v3039_v44, %v3038_v27 }
 0x1af   : > { %v3012_v23 = vadd.f32 %v3011_v25, %v3010_v54  ;;  %v3041_v56 = vrot.slane %v3040_v20, 2 }
 0x1b1   : > { %v3013_v58 = vrot.slane %v3012_v23, 1  ;;  %v3042_v5 = vadd.f32 %v3041_v56, %v3040_v20 }
 0x1b3   : > { %v3043_v22 = vrot.slane %v3042_v5, 1  ;;  %v3014_v18 = vadd.f32 %v3013_v58, %v3012_v23 }
 0x1b5   : > { %v3044_v31 = vadd.f32 %v3043_v22, %v3042_v5 }
 0x1b7   : > { %v3046_v51 = vsel %vm3045_vm6, %v3014_v18, %v3044_v31 }
 0x1b8   : > { %3051 = vst [vmem:[%s242_s12] sm:$0x3] %v3046_v51 }
 0x1b9   : > { %3953 = shalt.err (!%p3950_p5)
}
 0x1ba   : > { %s3954_s21 = scalar_lea.hbm %s4855_s24, 32  ;;  %s3958_s7 = scalar_lea.hbm %s4899_s4, 64 }
 0x1bb   : > { %p3955_p6 = scmp.ne.s32.totalorder %s4855_s24, %s3954_s21  ;;  %p3959_p10 = scmp.lt.s32.totalorder %s4855_s24, %s4899_s4 }
 0x1bc   : > { %p3960_p11 = scmp.lt.s32.totalorder %s3958_s7, %s3954_s21 }
 0x1bd   : > { %p3956_p7 = pnand %p3955_p6, %p4085_p4 }
 0x1be   : > { %p3961_p12 = por %p3960_p11, %p3959_p10 }
 0x1bf   : > { %p3957_p9 = pneg %p3956_p7 }
 0x1c1   : > { %p3962_p13 = pnand %p3961_p12, %p3957_p9 }
 0x1c3   : > { %3965 = shalt.err (!%p3962_p13)
}
 0x1c4   : > { %3826 = dma.vmem_to_hbm [thread:$0]  (%p4085_p4), %s3087_s13, 32, %s4855_s24, %s3069_s26  }
 0x1c5 PF: > { %p3832_p0 = scmp.ge.s32.totalorder %s4016_s20, 2  ;;  %s3110_s11 = sand.u32 1, %s3996_s15  }
 0x1c6   : > { %s3111_s12 = scalar_lea.sflag [#allocation3], %s3110_s11 }
 0x1c7   : > { %p3829_p1 = pnand %p3832_p0, %p4092_p8 }
 0x1c9   : > { %p3830_p2 = pneg %p3829_p1 }
 0x1cb   : > { %3991 = dma.done.wait (%p3830_p2), %s3111_s12, 32  }
 0x1cc   : > { %3993 = vsyncadd (%p3830_p2), %s3111_s12, 4294967264  ;;  %s18_s20 = sadd.s32 1, %s4016_s20   ;;  %s4936_s15 = smov %s4000_s16 }
 0x1cd   : > { %p15_p3 = scmp.ge.s32.totalorder %s18_s20, 4   ;;  %s4937_s16 = smov %s4004_s17 }
 0x1ce   : > { %s4938_s17 = smov %s4098_s28  ;;  %s4939_s18 = smov %s4012_s19 }
 0x1cf   : > { %s4940_s19 = smov %s4942_s23  ;;  %17 = sbr.rel (!%p15_p3) target bundleno = 4 (0x4), region = 108 }
 0x1d4   :  { %3116 = vsyncpa [#allocation3], 1 }
 0x1d5   :  { %3118 = vsyncpa [#allocation3 + $0x1], 1 }

</bundles_post_ra>
